<compile_context>
chip_gen: v7x
topology: tpu7x:2x2x1
jax: 0.10.0
libtpu: 0.0.40
codegen_flags: <defaults>
</compile_context>

<pallas_src>
import functools

import jax
import jax.numpy as jnp
from jax import lax
from jax.experimental import pallas as pl
from jax.experimental.pallas import tpu as pltpu

NUM_HEADS = 4
NEG_SLOPE = 0.2


# ------------------------- fused Pallas kernel -------------------------

def _gat_fused_kernel(num_layers, num_heads, x_ref, *refs):
    # refs = [per-layer: W, M_src, M_dst, edge_bias, bias, scale, shift] * L, out_ref
    # layouts: x [N, Fin]; W [Fin, H*C]; M_src [H, H*C]; M_dst [H*C, H];
    #          edge_bias [H, N, N] (edge-attention logits + (-1e30)*non-edge mask);
    #          bias/scale/shift [1, C]; out [N, C]   (all float32)
    out_ref = refs[-1]
    H = num_heads

    h = x_ref[...]
    for l in range(num_layers):                                   # static unroll over layers
        (w_ref, msrc_ref, mdst_ref, eb_ref,
         bias_ref, scale_ref, shift_ref) = refs[7 * l: 7 * (l + 1)]
        C = w_ref.shape[1] // H

        xp = jnp.dot(h, w_ref[...], preferred_element_type=jnp.float32)     # [N, H*C]

        # source scores directly row-oriented: [H, N] = M_src @ xp.T  (single MXU op)
        a_src_rows = lax.dot_general(
            msrc_ref[...], xp, (((1,), (1,)), ((), ())),
            preferred_element_type=jnp.float32)                              # [H, N]
        # destination scores column-oriented: [N, H]
        a_dst_cols = jnp.dot(xp, mdst_ref[...],
                             preferred_element_type=jnp.float32)             # [N, H]

        p_list = []
        for hh in range(H):                                                  # static unroll
            # logits[i, j] = a_dst[i,h] + a_src[j,h] + a_edge[h,i,j] (+ mask bias)
            z = a_dst_cols[:, hh:hh + 1] + a_src_rows[hh:hh + 1, :] + eb_ref[hh]
            z = jnp.where(z >= 0, z, NEG_SLOPE * z)                          # LeakyReLU(0.2)
            m = jnp.max(z, axis=1, keepdims=True)
            p = jnp.exp(z - m)                                               # masked -> 0
            denom = jnp.sum(p, axis=1, keepdims=True)                        # >= 1 (self-loop)
            p_list.append(p * pl.reciprocal(denom, approx=True))             # EUP reciprocal
        # batched aggregation: one matmul with K = H*N instead of H small matmuls
        p_all = jnp.concatenate(p_list, axis=1)                              # [N, H*N]
        x_all = jnp.concatenate(
            [xp[:, hh * C:(hh + 1) * C] for hh in range(H)], axis=0)         # [H*N, C]
        acc = jnp.dot(p_all, x_all, preferred_element_type=jnp.float32)      # [N, C]

        y = acc * jnp.float32(1.0 / H) + bias_ref[...]                       # head mean + bias
        y = y * scale_ref[...] + shift_ref[...]                              # folded eval BN
        if l < num_layers - 1:
            y = jnp.maximum(y, 0.0)                                          # ReLU
        h = y

    out_ref[...] = h.astype(out_ref.dtype)


def gat_forward_pallas(x, layer_kparams, bns, out_ch):
    """Whole multi-layer GAT forward in one pallas_call (activation stays in VMEM)."""
    L = len(layer_kparams)
    N = x.shape[0]
    args = [x]
    for l, lp in enumerate(layer_kparams):
        if l < L - 1:
            scale, shift = bns[l]
        else:
            C = lp["bias"].shape[1]
            scale = jnp.ones((1, C), jnp.float32)
            shift = jnp.zeros((1, C), jnp.float32)
        args += [lp["W"], lp["msrc"], lp["mdst"], lp["eb"], lp["bias"], scale, shift]

    vmem = pl.BlockSpec(memory_space=pltpu.MemorySpace.VMEM)
    kern = functools.partial(_gat_fused_kernel, L, NUM_HEADS)
    return pl.pallas_call(
        kern,
        out_shape=jax.ShapeDtypeStruct((N, out_ch), jnp.float32),
        in_specs=[vmem] * len(args),
        out_specs=vmem,
    )(*args)


# ------------------------- parameter / graph setup (glue) -------------------------

def init_conv_params(key, fin, fout, heads, edge_dim):
    ks = jax.random.split(key, 6)
    W = 0.2 * jax.random.normal(ks[0], (fin, heads * fout), jnp.float32)
    att_src = 0.2 * jax.random.normal(ks[1], (heads, fout), jnp.float32)
    att_dst = 0.2 * jax.random.normal(ks[2], (heads, fout), jnp.float32)
    W_edge = 0.2 * jax.random.normal(ks[3], (edge_dim, heads * fout), jnp.float32)
    att_edge = 0.2 * jax.random.normal(ks[4], (heads, fout), jnp.float32)
    bias = 0.1 * jax.random.normal(ks[5], (1, fout), jnp.float32)
    # fold lin_edge + att_edge:  A_e[h, d] = sum_c W_edge[d, h*C + c] * att_edge[h, c]
    A_e = jnp.einsum("dhc,hc->hd", W_edge.reshape(edge_dim, heads, fout), att_edge)
    return dict(W=W, att_src=att_src, att_dst=att_dst, A_e=A_e, bias=bias)


def init_bn_scale_shift(key, c):
    k1, k2, k3, k4 = jax.random.split(key, 4)
    gamma = 1.0 + 0.1 * jax.random.normal(k1, (1, c), jnp.float32)
    beta = 0.1 * jax.random.normal(k2, (1, c), jnp.float32)
    rmean = 0.1 * jax.random.normal(k3, (1, c), jnp.float32)
    rvar = 1.0 + 0.1 * jnp.abs(jax.random.normal(k4, (1, c), jnp.float32))
    scale = gamma / jnp.sqrt(rvar + 1e-5)
    shift = beta - rmean * scale
    return scale, shift


def densify_graph(edge_index, edge_attr, num_nodes):
    """Add self-loops (fill_value='mean' over incoming edge attrs, as in PyG GATConv)
    and build the dense adjacency / edge-attr tensors."""
    src, dst = edge_index[0], edge_index[1]
    De = edge_attr.shape[-1]
    deg = jnp.zeros((num_nodes,), jnp.float32).at[dst].add(1.0)
    sum_in = jnp.zeros((num_nodes, De), jnp.float32).at[dst].add(edge_attr)
    mean_in = sum_in / jnp.maximum(deg, 1.0)[:, None]

    idx = jnp.arange(num_nodes)
    adj = jnp.zeros((num_nodes, num_nodes), jnp.float32).at[dst, src].set(1.0)
    adj = adj.at[idx, idx].set(1.0)
    edge_dense = jnp.zeros((num_nodes, num_nodes, De), jnp.float32).at[dst, src].set(edge_attr)
    edge_dense = edge_dense.at[idx, idx].set(mean_in)

    # self-loop-augmented edge lists (used only by the pure-JAX reference)
    src_sl = jnp.concatenate([src, idx])
    dst_sl = jnp.concatenate([dst, idx])
    attr_sl = jnp.concatenate([edge_attr, mean_in], axis=0)
    return adj, edge_dense, (src_sl, dst_sl, attr_sl)


def build_layer_kernel_params(p, edge_dense, adj):
    """Precompute, per layer, the lane-friendly kernel operands (one-time glue):
       - block-diagonal attention matrices M_src [H, H*C], M_dst [H*C, H]
       - edge-attention logits + additive adjacency mask as one [H, N, N] slab."""
    H = NUM_HEADS
    C = p["W"].shape[1] // H
    eye = jnp.eye(H, dtype=jnp.float32)
    msrc = (eye[:, :, None] * p["att_src"][:, None, :]).reshape(H, H * C)           # [H, H*C]
    mdst = (eye[:, :, None] * p["att_dst"][:, None, :]).transpose(1, 2, 0).reshape(H * C, H)

    N = adj.shape[0]
    De = edge_dense.shape[-1]
    a_edge = (edge_dense.reshape(N * N, De) @ p["A_e"].T).T.reshape(H, N, N)         # [H, N, N]
    mask_bias = (adj - 1.0) * 1e30                                                   # 0 / -1e30
    eb = a_edge + mask_bias[None]
    return dict(W=p["W"], msrc=msrc, mdst=mdst, eb=eb, bias=p["bias"])


# ------------------------- pure-JAX reference (for verification) -------------------------

def gat_conv_ref(x, p, src, dst, edge_attr, num_nodes):
    H = NUM_HEADS
    C = p["W"].shape[1] // H
    xp = (x @ p["W"]).reshape(num_nodes, H, C)
    a_src = jnp.sum(xp * p["att_src"][None], axis=-1)        # [N, H]
    a_dst = jnp.sum(xp * p["att_dst"][None], axis=-1)        # [N, H]
    a_edge = edge_attr @ p["A_e"].T                          # [E, H]
    alpha = a_src[src] + a_dst[dst] + a_edge
    alpha = jax.nn.leaky_relu(alpha, NEG_SLOPE)
    amax = jax.ops.segment_max(alpha, dst, num_segments=num_nodes)
    ex = jnp.exp(alpha - amax[dst])
    denom = jax.ops.segment_sum(ex, dst, num_segments=num_nodes)
    coef = ex / denom[dst]
    msg = xp[src] * coef[:, :, None]
    out = jax.ops.segment_sum(msg, dst, num_segments=num_nodes)
    return out.mean(axis=1) + p["bias"][0]


def gat_forward_ref(x, convs, bns, src, dst, edge_attr, num_nodes):
    h = x
    for i in range(len(convs) - 1):
        h = gat_conv_ref(h, convs[i], src, dst, edge_attr, num_nodes)
        scale, shift = bns[i]
        h = jnp.maximum(h * scale + shift, 0.0)
    return gat_conv_ref(h, convs[-1], src, dst, edge_attr, num_nodes)


# ------------------------- main -------------------------

if __name__ == "__main__":
    IN_CH, HID_CH, OUT_CH, NUM_LAYERS = 8, 32, 16, 3
    N = 16

    key = jax.random.PRNGKey(0)
    k_x, k_e, k_p = jax.random.split(key, 3)

    # synthetic graph: two directed "ring" edge sets (no pre-existing self loops)
    src = jnp.concatenate([jnp.arange(N), jnp.arange(N)])
    dst = jnp.concatenate([(jnp.arange(N) + 1) % N, (jnp.arange(N) + 3) % N])
    edge_index = jnp.stack([src, dst]).astype(jnp.int32)        # [2, E], row0=src, row1=dst
    E = edge_index.shape[1]

    x = jax.random.normal(k_x, (N, IN_CH), jnp.float32)
    edge_attr = jax.random.normal(k_e, (E, IN_CH), jnp.float32)

    # deterministic parameter init
    layer_dims = [(IN_CH, HID_CH)] + [(HID_CH, HID_CH)] * (NUM_LAYERS - 2) + [(HID_CH, OUT_CH)]
    keys = jax.random.split(k_p, 2 * NUM_LAYERS)
    convs = [init_conv_params(keys[i], fi, fo, NUM_HEADS, IN_CH)
             for i, (fi, fo) in enumerate(layer_dims)]
    bns = [init_bn_scale_shift(keys[NUM_LAYERS + i], HID_CH) for i in range(NUM_LAYERS - 1)]

    adj, edge_dense, (src_sl, dst_sl, attr_sl) = densify_graph(edge_index, edge_attr, N)

    # one-time per-layer precompute of kernel operands (edge-attention + mask hoisted)
    kparams = [build_layer_kernel_params(p, edge_dense, adj) for p in convs]

    out = gat_forward_pallas(x, kparams, bns, OUT_CH)
    out = jax.block_until_ready(out)

    # module returns (x, edge_attr)
    result = (out, edge_attr)

    ref = gat_forward_ref(x, convs, bns, src_sl, dst_sl, attr_sl, N)
    assert result[0].shape == (N, OUT_CH)
    assert jnp.allclose(result[0], ref, atol=1e-2, rtol=1e-2), "kernel/ref mismatch"

    print("KERNEL_OK")
</pallas_src>

<mosaic_0001>
module attributes {stable_mosaic.version = 11 : i64} {
  func.func @_gat_fused_kernel(%arg0: memref<16x8xf32, #tpu.memory_space<vmem>>, %arg1: memref<8x128xf32, #tpu.memory_space<vmem>>, %arg2: memref<4x128xf32, #tpu.memory_space<vmem>>, %arg3: memref<128x4xf32, #tpu.memory_space<vmem>>, %arg4: memref<4x16x16xf32, #tpu.memory_space<vmem>>, %arg5: memref<1x32xf32, #tpu.memory_space<vmem>>, %arg6: memref<1x32xf32, #tpu.memory_space<vmem>>, %arg7: memref<1x32xf32, #tpu.memory_space<vmem>>, %arg8: memref<32x128xf32, #tpu.memory_space<vmem>>, %arg9: memref<4x128xf32, #tpu.memory_space<vmem>>, %arg10: memref<128x4xf32, #tpu.memory_space<vmem>>, %arg11: memref<4x16x16xf32, #tpu.memory_space<vmem>>, %arg12: memref<1x32xf32, #tpu.memory_space<vmem>>, %arg13: memref<1x32xf32, #tpu.memory_space<vmem>>, %arg14: memref<1x32xf32, #tpu.memory_space<vmem>>, %arg15: memref<32x64xf32, #tpu.memory_space<vmem>>, %arg16: memref<4x64xf32, #tpu.memory_space<vmem>>, %arg17: memref<64x4xf32, #tpu.memory_space<vmem>>, %arg18: memref<4x16x16xf32, #tpu.memory_space<vmem>>, %arg19: memref<1x16xf32, #tpu.memory_space<vmem>>, %arg20: memref<1x16xf32, #tpu.memory_space<vmem>>, %arg21: memref<1x16xf32, #tpu.memory_space<vmem>>, %arg22: memref<16x16xf32, #tpu.memory_space<vmem>>) attributes {dimension_semantics = [], scalar_prefetch = 0 : i64, scratch_operands = 0 : i64, tpu.core_type = #tpu.core_type<tc>} {
    %c0 = arith.constant 0 : index
    %c0_0 = arith.constant 0 : index
    %0 = vector.load %arg0[%c0, %c0_0] : memref<16x8xf32, #tpu.memory_space<vmem>>, vector<16x8xf32>
    %c0_1 = arith.constant 0 : index
    %c0_2 = arith.constant 0 : index
    %1 = vector.load %arg1[%c0_1, %c0_2] : memref<8x128xf32, #tpu.memory_space<vmem>>, vector<8x128xf32>
    %cst = arith.constant dense<0.000000e+00> : vector<16x128xf32>
    %2 = tpu.matmul %0, %1, %cst {dimension_numbers = #tpu.dot_dimension_numbers<[1], [0], [0], [1], [0, 0, 1, 1], [], []>} : vector<16x8xf32>, vector<8x128xf32>, vector<16x128xf32> -> vector<16x128xf32>
    %c0_3 = arith.constant 0 : index
    %c0_4 = arith.constant 0 : index
    %3 = vector.load %arg2[%c0_3, %c0_4] : memref<4x128xf32, #tpu.memory_space<vmem>>, vector<4x128xf32>
    %cst_5 = arith.constant dense<0.000000e+00> : vector<4x16xf32>
    %4 = tpu.matmul %3, %2, %cst_5 {dimension_numbers = #tpu.dot_dimension_numbers<[1], [1], [0], [0], [0, 0, 1, 0], [], []>} : vector<4x128xf32>, vector<16x128xf32>, vector<4x16xf32> -> vector<4x16xf32>
    %c0_6 = arith.constant 0 : index
    %c0_7 = arith.constant 0 : index
    %5 = vector.load %arg3[%c0_6, %c0_7] : memref<128x4xf32, #tpu.memory_space<vmem>>, vector<128x4xf32>
    %cst_8 = arith.constant dense<0.000000e+00> : vector<16x4xf32>
    %6 = tpu.matmul %2, %5, %cst_8 {dimension_numbers = #tpu.dot_dimension_numbers<[1], [0], [0], [1], [0, 0, 1, 1], [], []>} : vector<16x128xf32>, vector<128x4xf32>, vector<16x4xf32> -> vector<16x4xf32>
    %7 = vector.extract_strided_slice %6 {offsets = [0, 0], sizes = [16, 1], strides = [1, 1]} : vector<16x4xf32> to vector<16x1xf32>
    %8 = vector.extract_strided_slice %4 {offsets = [0, 0], sizes = [1, 16], strides = [1, 1]} : vector<4x16xf32> to vector<1x16xf32>
    %9 = vector.broadcast %7 : vector<16x1xf32> to vector<16x16xf32>
    %10 = vector.broadcast %8 : vector<1x16xf32> to vector<16x16xf32>
    %11 = arith.addf %9, %10 : vector<16x16xf32>
    %c0_9 = arith.constant 0 : index
    %c0_10 = arith.constant 0 : index
    %c0_11 = arith.constant 0 : index
    %12 = vector.load %arg4[%c0_9, %c0_10, %c0_11] : memref<4x16x16xf32, #tpu.memory_space<vmem>>, vector<1x16x16xf32>
    %13 = vector.shape_cast %12 : vector<1x16x16xf32> to vector<16x16xf32>
    %14 = arith.addf %11, %13 : vector<16x16xf32>
    %cst_12 = arith.constant 0.000000e+00 : f32
    %15 = vector.broadcast %cst_12 : f32 to vector<16x16xf32>
    %16 = arith.cmpf oge, %14, %15 : vector<16x16xf32>
    %cst_13 = arith.constant 2.000000e-01 : f32
    %17 = vector.broadcast %cst_13 : f32 to vector<16x16xf32>
    %18 = arith.mulf %17, %14 : vector<16x16xf32>
    %19 = arith.select %16, %14, %18 : vector<16x16xi1>, vector<16x16xf32>
    %cst_14 = arith.constant dense<0xFF800000> : vector<16xf32>
    %20 = vector.multi_reduction <maximumf>, %19, %cst_14 [1] : vector<16x16xf32> to vector<16xf32>
    %21 = vector.shape_cast %20 : vector<16xf32> to vector<16x1xf32>
    %22 = vector.broadcast %21 : vector<16x1xf32> to vector<16x16xf32>
    %23 = arith.subf %19, %22 : vector<16x16xf32>
    %24 = math.exp %23 : vector<16x16xf32>
    %cst_15 = arith.constant dense<0.000000e+00> : vector<16xf32>
    %25 = vector.multi_reduction <add>, %24, %cst_15 [1] : vector<16x16xf32> to vector<16xf32>
    %26 = vector.shape_cast %25 : vector<16xf32> to vector<16x1xf32>
    %27 = tpu.reciprocal %26 {approx = true} : vector<16x1xf32> -> vector<16x1xf32>
    %28 = vector.broadcast %27 : vector<16x1xf32> to vector<16x16xf32>
    %29 = arith.mulf %24, %28 : vector<16x16xf32>
    %30 = vector.extract_strided_slice %6 {offsets = [0, 1], sizes = [16, 1], strides = [1, 1]} : vector<16x4xf32> to vector<16x1xf32>
    %31 = vector.extract_strided_slice %4 {offsets = [1, 0], sizes = [1, 16], strides = [1, 1]} : vector<4x16xf32> to vector<1x16xf32>
    %32 = vector.broadcast %30 : vector<16x1xf32> to vector<16x16xf32>
    %33 = vector.broadcast %31 : vector<1x16xf32> to vector<16x16xf32>
    %34 = arith.addf %32, %33 : vector<16x16xf32>
    %c1 = arith.constant 1 : index
    %c0_16 = arith.constant 0 : index
    %c0_17 = arith.constant 0 : index
    %35 = vector.load %arg4[%c1, %c0_16, %c0_17] : memref<4x16x16xf32, #tpu.memory_space<vmem>>, vector<1x16x16xf32>
    %36 = vector.shape_cast %35 : vector<1x16x16xf32> to vector<16x16xf32>
    %37 = arith.addf %34, %36 : vector<16x16xf32>
    %cst_18 = arith.constant 0.000000e+00 : f32
    %38 = vector.broadcast %cst_18 : f32 to vector<16x16xf32>
    %39 = arith.cmpf oge, %37, %38 : vector<16x16xf32>
    %cst_19 = arith.constant 2.000000e-01 : f32
    %40 = vector.broadcast %cst_19 : f32 to vector<16x16xf32>
    %41 = arith.mulf %40, %37 : vector<16x16xf32>
    %42 = arith.select %39, %37, %41 : vector<16x16xi1>, vector<16x16xf32>
    %cst_20 = arith.constant dense<0xFF800000> : vector<16xf32>
    %43 = vector.multi_reduction <maximumf>, %42, %cst_20 [1] : vector<16x16xf32> to vector<16xf32>
    %44 = vector.shape_cast %43 : vector<16xf32> to vector<16x1xf32>
    %45 = vector.broadcast %44 : vector<16x1xf32> to vector<16x16xf32>
    %46 = arith.subf %42, %45 : vector<16x16xf32>
    %47 = math.exp %46 : vector<16x16xf32>
    %cst_21 = arith.constant dense<0.000000e+00> : vector<16xf32>
    %48 = vector.multi_reduction <add>, %47, %cst_21 [1] : vector<16x16xf32> to vector<16xf32>
    %49 = vector.shape_cast %48 : vector<16xf32> to vector<16x1xf32>
    %50 = tpu.reciprocal %49 {approx = true} : vector<16x1xf32> -> vector<16x1xf32>
    %51 = vector.broadcast %50 : vector<16x1xf32> to vector<16x16xf32>
    %52 = arith.mulf %47, %51 : vector<16x16xf32>
    %53 = vector.extract_strided_slice %6 {offsets = [0, 2], sizes = [16, 1], strides = [1, 1]} : vector<16x4xf32> to vector<16x1xf32>
    %54 = vector.extract_strided_slice %4 {offsets = [2, 0], sizes = [1, 16], strides = [1, 1]} : vector<4x16xf32> to vector<1x16xf32>
    %55 = vector.broadcast %53 : vector<16x1xf32> to vector<16x16xf32>
    %56 = vector.broadcast %54 : vector<1x16xf32> to vector<16x16xf32>
    %57 = arith.addf %55, %56 : vector<16x16xf32>
    %c2 = arith.constant 2 : index
    %c0_22 = arith.constant 0 : index
    %c0_23 = arith.constant 0 : index
    %58 = vector.load %arg4[%c2, %c0_22, %c0_23] : memref<4x16x16xf32, #tpu.memory_space<vmem>>, vector<1x16x16xf32>
    %59 = vector.shape_cast %58 : vector<1x16x16xf32> to vector<16x16xf32>
    %60 = arith.addf %57, %59 : vector<16x16xf32>
    %cst_24 = arith.constant 0.000000e+00 : f32
    %61 = vector.broadcast %cst_24 : f32 to vector<16x16xf32>
    %62 = arith.cmpf oge, %60, %61 : vector<16x16xf32>
    %cst_25 = arith.constant 2.000000e-01 : f32
    %63 = vector.broadcast %cst_25 : f32 to vector<16x16xf32>
    %64 = arith.mulf %63, %60 : vector<16x16xf32>
    %65 = arith.select %62, %60, %64 : vector<16x16xi1>, vector<16x16xf32>
    %cst_26 = arith.constant dense<0xFF800000> : vector<16xf32>
    %66 = vector.multi_reduction <maximumf>, %65, %cst_26 [1] : vector<16x16xf32> to vector<16xf32>
    %67 = vector.shape_cast %66 : vector<16xf32> to vector<16x1xf32>
    %68 = vector.broadcast %67 : vector<16x1xf32> to vector<16x16xf32>
    %69 = arith.subf %65, %68 : vector<16x16xf32>
    %70 = math.exp %69 : vector<16x16xf32>
    %cst_27 = arith.constant dense<0.000000e+00> : vector<16xf32>
    %71 = vector.multi_reduction <add>, %70, %cst_27 [1] : vector<16x16xf32> to vector<16xf32>
    %72 = vector.shape_cast %71 : vector<16xf32> to vector<16x1xf32>
    %73 = tpu.reciprocal %72 {approx = true} : vector<16x1xf32> -> vector<16x1xf32>
    %74 = vector.broadcast %73 : vector<16x1xf32> to vector<16x16xf32>
    %75 = arith.mulf %70, %74 : vector<16x16xf32>
    %76 = vector.extract_strided_slice %6 {offsets = [0, 3], sizes = [16, 1], strides = [1, 1]} : vector<16x4xf32> to vector<16x1xf32>
    %77 = vector.extract_strided_slice %4 {offsets = [3, 0], sizes = [1, 16], strides = [1, 1]} : vector<4x16xf32> to vector<1x16xf32>
    %78 = vector.broadcast %76 : vector<16x1xf32> to vector<16x16xf32>
    %79 = vector.broadcast %77 : vector<1x16xf32> to vector<16x16xf32>
    %80 = arith.addf %78, %79 : vector<16x16xf32>
    %c3 = arith.constant 3 : index
    %c0_28 = arith.constant 0 : index
    %c0_29 = arith.constant 0 : index
    %81 = vector.load %arg4[%c3, %c0_28, %c0_29] : memref<4x16x16xf32, #tpu.memory_space<vmem>>, vector<1x16x16xf32>
    %82 = vector.shape_cast %81 : vector<1x16x16xf32> to vector<16x16xf32>
    %83 = arith.addf %80, %82 : vector<16x16xf32>
    %cst_30 = arith.constant 0.000000e+00 : f32
    %84 = vector.broadcast %cst_30 : f32 to vector<16x16xf32>
    %85 = arith.cmpf oge, %83, %84 : vector<16x16xf32>
    %cst_31 = arith.constant 2.000000e-01 : f32
    %86 = vector.broadcast %cst_31 : f32 to vector<16x16xf32>
    %87 = arith.mulf %86, %83 : vector<16x16xf32>
    %88 = arith.select %85, %83, %87 : vector<16x16xi1>, vector<16x16xf32>
    %cst_32 = arith.constant dense<0xFF800000> : vector<16xf32>
    %89 = vector.multi_reduction <maximumf>, %88, %cst_32 [1] : vector<16x16xf32> to vector<16xf32>
    %90 = vector.shape_cast %89 : vector<16xf32> to vector<16x1xf32>
    %91 = vector.broadcast %90 : vector<16x1xf32> to vector<16x16xf32>
    %92 = arith.subf %88, %91 : vector<16x16xf32>
    %93 = math.exp %92 : vector<16x16xf32>
    %cst_33 = arith.constant dense<0.000000e+00> : vector<16xf32>
    %94 = vector.multi_reduction <add>, %93, %cst_33 [1] : vector<16x16xf32> to vector<16xf32>
    %95 = vector.shape_cast %94 : vector<16xf32> to vector<16x1xf32>
    %96 = tpu.reciprocal %95 {approx = true} : vector<16x1xf32> -> vector<16x1xf32>
    %97 = vector.broadcast %96 : vector<16x1xf32> to vector<16x16xf32>
    %98 = arith.mulf %93, %97 : vector<16x16xf32>
    %99 = tpu.concatenate %29, %52, %75, %98 in 1 : vector<16x16xf32>, vector<16x16xf32>, vector<16x16xf32>, vector<16x16xf32> -> vector<16x64xf32>
    %100 = vector.extract_strided_slice %2 {offsets = [0, 0], sizes = [16, 32], strides = [1, 1]} : vector<16x128xf32> to vector<16x32xf32>
    %101 = vector.extract_strided_slice %2 {offsets = [0, 32], sizes = [16, 32], strides = [1, 1]} : vector<16x128xf32> to vector<16x32xf32>
    %102 = vector.extract_strided_slice %2 {offsets = [0, 64], sizes = [16, 32], strides = [1, 1]} : vector<16x128xf32> to vector<16x32xf32>
    %103 = vector.extract_strided_slice %2 {offsets = [0, 96], sizes = [16, 32], strides = [1, 1]} : vector<16x128xf32> to vector<16x32xf32>
    %104 = tpu.concatenate %100, %101, %102, %103 in 0 : vector<16x32xf32>, vector<16x32xf32>, vector<16x32xf32>, vector<16x32xf32> -> vector<64x32xf32>
    %cst_34 = arith.constant dense<0.000000e+00> : vector<16x32xf32>
    %105 = tpu.matmul %99, %104, %cst_34 {dimension_numbers = #tpu.dot_dimension_numbers<[1], [0], [0], [1], [0, 0, 1, 1], [], []>} : vector<16x64xf32>, vector<64x32xf32>, vector<16x32xf32> -> vector<16x32xf32>
    %cst_35 = arith.constant 2.500000e-01 : f32
    %106 = vector.broadcast %cst_35 : f32 to vector<16x32xf32>
    %107 = arith.mulf %105, %106 : vector<16x32xf32>
    %c0_36 = arith.constant 0 : index
    %c0_37 = arith.constant 0 : index
    %108 = vector.load %arg5[%c0_36, %c0_37] : memref<1x32xf32, #tpu.memory_space<vmem>>, vector<1x32xf32>
    %109 = vector.broadcast %108 : vector<1x32xf32> to vector<16x32xf32>
    %110 = arith.addf %107, %109 : vector<16x32xf32>
    %c0_38 = arith.constant 0 : index
    %c0_39 = arith.constant 0 : index
    %111 = vector.load %arg6[%c0_38, %c0_39] : memref<1x32xf32, #tpu.memory_space<vmem>>, vector<1x32xf32>
    %112 = vector.broadcast %111 : vector<1x32xf32> to vector<16x32xf32>
    %113 = arith.mulf %110, %112 : vector<16x32xf32>
    %c0_40 = arith.constant 0 : index
    %c0_41 = arith.constant 0 : index
    %114 = vector.load %arg7[%c0_40, %c0_41] : memref<1x32xf32, #tpu.memory_space<vmem>>, vector<1x32xf32>
    %115 = vector.broadcast %114 : vector<1x32xf32> to vector<16x32xf32>
    %116 = arith.addf %113, %115 : vector<16x32xf32>
    %cst_42 = arith.constant 0.000000e+00 : f32
    %117 = vector.broadcast %cst_42 : f32 to vector<16x32xf32>
    %118 = arith.maximumf %116, %117 : vector<16x32xf32>
    %c0_43 = arith.constant 0 : index
    %c0_44 = arith.constant 0 : index
    %119 = vector.load %arg8[%c0_43, %c0_44] : memref<32x128xf32, #tpu.memory_space<vmem>>, vector<32x128xf32>
    %cst_45 = arith.constant dense<0.000000e+00> : vector<16x128xf32>
    %120 = tpu.matmul %118, %119, %cst_45 {dimension_numbers = #tpu.dot_dimension_numbers<[1], [0], [0], [1], [0, 0, 1, 1], [], []>} : vector<16x32xf32>, vector<32x128xf32>, vector<16x128xf32> -> vector<16x128xf32>
    %c0_46 = arith.constant 0 : index
    %c0_47 = arith.constant 0 : index
    %121 = vector.load %arg9[%c0_46, %c0_47] : memref<4x128xf32, #tpu.memory_space<vmem>>, vector<4x128xf32>
    %cst_48 = arith.constant dense<0.000000e+00> : vector<4x16xf32>
    %122 = tpu.matmul %121, %120, %cst_48 {dimension_numbers = #tpu.dot_dimension_numbers<[1], [1], [0], [0], [0, 0, 1, 0], [], []>} : vector<4x128xf32>, vector<16x128xf32>, vector<4x16xf32> -> vector<4x16xf32>
    %c0_49 = arith.constant 0 : index
    %c0_50 = arith.constant 0 : index
    %123 = vector.load %arg10[%c0_49, %c0_50] : memref<128x4xf32, #tpu.memory_space<vmem>>, vector<128x4xf32>
    %cst_51 = arith.constant dense<0.000000e+00> : vector<16x4xf32>
    %124 = tpu.matmul %120, %123, %cst_51 {dimension_numbers = #tpu.dot_dimension_numbers<[1], [0], [0], [1], [0, 0, 1, 1], [], []>} : vector<16x128xf32>, vector<128x4xf32>, vector<16x4xf32> -> vector<16x4xf32>
    %125 = vector.extract_strided_slice %124 {offsets = [0, 0], sizes = [16, 1], strides = [1, 1]} : vector<16x4xf32> to vector<16x1xf32>
    %126 = vector.extract_strided_slice %122 {offsets = [0, 0], sizes = [1, 16], strides = [1, 1]} : vector<4x16xf32> to vector<1x16xf32>
    %127 = vector.broadcast %125 : vector<16x1xf32> to vector<16x16xf32>
    %128 = vector.broadcast %126 : vector<1x16xf32> to vector<16x16xf32>
    %129 = arith.addf %127, %128 : vector<16x16xf32>
    %c0_52 = arith.constant 0 : index
    %c0_53 = arith.constant 0 : index
    %c0_54 = arith.constant 0 : index
    %130 = vector.load %arg11[%c0_52, %c0_53, %c0_54] : memref<4x16x16xf32, #tpu.memory_space<vmem>>, vector<1x16x16xf32>
    %131 = vector.shape_cast %130 : vector<1x16x16xf32> to vector<16x16xf32>
    %132 = arith.addf %129, %131 : vector<16x16xf32>
    %cst_55 = arith.constant 0.000000e+00 : f32
    %133 = vector.broadcast %cst_55 : f32 to vector<16x16xf32>
    %134 = arith.cmpf oge, %132, %133 : vector<16x16xf32>
    %cst_56 = arith.constant 2.000000e-01 : f32
    %135 = vector.broadcast %cst_56 : f32 to vector<16x16xf32>
    %136 = arith.mulf %135, %132 : vector<16x16xf32>
    %137 = arith.select %134, %132, %136 : vector<16x16xi1>, vector<16x16xf32>
    %cst_57 = arith.constant dense<0xFF800000> : vector<16xf32>
    %138 = vector.multi_reduction <maximumf>, %137, %cst_57 [1] : vector<16x16xf32> to vector<16xf32>
    %139 = vector.shape_cast %138 : vector<16xf32> to vector<16x1xf32>
    %140 = vector.broadcast %139 : vector<16x1xf32> to vector<16x16xf32>
    %141 = arith.subf %137, %140 : vector<16x16xf32>
    %142 = math.exp %141 : vector<16x16xf32>
    %cst_58 = arith.constant dense<0.000000e+00> : vector<16xf32>
    %143 = vector.multi_reduction <add>, %142, %cst_58 [1] : vector<16x16xf32> to vector<16xf32>
    %144 = vector.shape_cast %143 : vector<16xf32> to vector<16x1xf32>
    %145 = tpu.reciprocal %144 {approx = true} : vector<16x1xf32> -> vector<16x1xf32>
    %146 = vector.broadcast %145 : vector<16x1xf32> to vector<16x16xf32>
    %147 = arith.mulf %142, %146 : vector<16x16xf32>
    %148 = vector.extract_strided_slice %124 {offsets = [0, 1], sizes = [16, 1], strides = [1, 1]} : vector<16x4xf32> to vector<16x1xf32>
    %149 = vector.extract_strided_slice %122 {offsets = [1, 0], sizes = [1, 16], strides = [1, 1]} : vector<4x16xf32> to vector<1x16xf32>
    %150 = vector.broadcast %148 : vector<16x1xf32> to vector<16x16xf32>
    %151 = vector.broadcast %149 : vector<1x16xf32> to vector<16x16xf32>
    %152 = arith.addf %150, %151 : vector<16x16xf32>
    %c1_59 = arith.constant 1 : index
    %c0_60 = arith.constant 0 : index
    %c0_61 = arith.constant 0 : index
    %153 = vector.load %arg11[%c1_59, %c0_60, %c0_61] : memref<4x16x16xf32, #tpu.memory_space<vmem>>, vector<1x16x16xf32>
    %154 = vector.shape_cast %153 : vector<1x16x16xf32> to vector<16x16xf32>
    %155 = arith.addf %152, %154 : vector<16x16xf32>
    %cst_62 = arith.constant 0.000000e+00 : f32
    %156 = vector.broadcast %cst_62 : f32 to vector<16x16xf32>
    %157 = arith.cmpf oge, %155, %156 : vector<16x16xf32>
    %cst_63 = arith.constant 2.000000e-01 : f32
    %158 = vector.broadcast %cst_63 : f32 to vector<16x16xf32>
    %159 = arith.mulf %158, %155 : vector<16x16xf32>
    %160 = arith.select %157, %155, %159 : vector<16x16xi1>, vector<16x16xf32>
    %cst_64 = arith.constant dense<0xFF800000> : vector<16xf32>
    %161 = vector.multi_reduction <maximumf>, %160, %cst_64 [1] : vector<16x16xf32> to vector<16xf32>
    %162 = vector.shape_cast %161 : vector<16xf32> to vector<16x1xf32>
    %163 = vector.broadcast %162 : vector<16x1xf32> to vector<16x16xf32>
    %164 = arith.subf %160, %163 : vector<16x16xf32>
    %165 = math.exp %164 : vector<16x16xf32>
    %cst_65 = arith.constant dense<0.000000e+00> : vector<16xf32>
    %166 = vector.multi_reduction <add>, %165, %cst_65 [1] : vector<16x16xf32> to vector<16xf32>
    %167 = vector.shape_cast %166 : vector<16xf32> to vector<16x1xf32>
    %168 = tpu.reciprocal %167 {approx = true} : vector<16x1xf32> -> vector<16x1xf32>
    %169 = vector.broadcast %168 : vector<16x1xf32> to vector<16x16xf32>
    %170 = arith.mulf %165, %169 : vector<16x16xf32>
    %171 = vector.extract_strided_slice %124 {offsets = [0, 2], sizes = [16, 1], strides = [1, 1]} : vector<16x4xf32> to vector<16x1xf32>
    %172 = vector.extract_strided_slice %122 {offsets = [2, 0], sizes = [1, 16], strides = [1, 1]} : vector<4x16xf32> to vector<1x16xf32>
    %173 = vector.broadcast %171 : vector<16x1xf32> to vector<16x16xf32>
    %174 = vector.broadcast %172 : vector<1x16xf32> to vector<16x16xf32>
    %175 = arith.addf %173, %174 : vector<16x16xf32>
    %c2_66 = arith.constant 2 : index
    %c0_67 = arith.constant 0 : index
    %c0_68 = arith.constant 0 : index
    %176 = vector.load %arg11[%c2_66, %c0_67, %c0_68] : memref<4x16x16xf32, #tpu.memory_space<vmem>>, vector<1x16x16xf32>
    %177 = vector.shape_cast %176 : vector<1x16x16xf32> to vector<16x16xf32>
    %178 = arith.addf %175, %177 : vector<16x16xf32>
    %cst_69 = arith.constant 0.000000e+00 : f32
    %179 = vector.broadcast %cst_69 : f32 to vector<16x16xf32>
    %180 = arith.cmpf oge, %178, %179 : vector<16x16xf32>
    %cst_70 = arith.constant 2.000000e-01 : f32
    %181 = vector.broadcast %cst_70 : f32 to vector<16x16xf32>
    %182 = arith.mulf %181, %178 : vector<16x16xf32>
    %183 = arith.select %180, %178, %182 : vector<16x16xi1>, vector<16x16xf32>
    %cst_71 = arith.constant dense<0xFF800000> : vector<16xf32>
    %184 = vector.multi_reduction <maximumf>, %183, %cst_71 [1] : vector<16x16xf32> to vector<16xf32>
    %185 = vector.shape_cast %184 : vector<16xf32> to vector<16x1xf32>
    %186 = vector.broadcast %185 : vector<16x1xf32> to vector<16x16xf32>
    %187 = arith.subf %183, %186 : vector<16x16xf32>
    %188 = math.exp %187 : vector<16x16xf32>
    %cst_72 = arith.constant dense<0.000000e+00> : vector<16xf32>
    %189 = vector.multi_reduction <add>, %188, %cst_72 [1] : vector<16x16xf32> to vector<16xf32>
    %190 = vector.shape_cast %189 : vector<16xf32> to vector<16x1xf32>
    %191 = tpu.reciprocal %190 {approx = true} : vector<16x1xf32> -> vector<16x1xf32>
    %192 = vector.broadcast %191 : vector<16x1xf32> to vector<16x16xf32>
    %193 = arith.mulf %188, %192 : vector<16x16xf32>
    %194 = vector.extract_strided_slice %124 {offsets = [0, 3], sizes = [16, 1], strides = [1, 1]} : vector<16x4xf32> to vector<16x1xf32>
    %195 = vector.extract_strided_slice %122 {offsets = [3, 0], sizes = [1, 16], strides = [1, 1]} : vector<4x16xf32> to vector<1x16xf32>
    %196 = vector.broadcast %194 : vector<16x1xf32> to vector<16x16xf32>
    %197 = vector.broadcast %195 : vector<1x16xf32> to vector<16x16xf32>
    %198 = arith.addf %196, %197 : vector<16x16xf32>
    %c3_73 = arith.constant 3 : index
    %c0_74 = arith.constant 0 : index
    %c0_75 = arith.constant 0 : index
    %199 = vector.load %arg11[%c3_73, %c0_74, %c0_75] : memref<4x16x16xf32, #tpu.memory_space<vmem>>, vector<1x16x16xf32>
    %200 = vector.shape_cast %199 : vector<1x16x16xf32> to vector<16x16xf32>
    %201 = arith.addf %198, %200 : vector<16x16xf32>
    %cst_76 = arith.constant 0.000000e+00 : f32
    %202 = vector.broadcast %cst_76 : f32 to vector<16x16xf32>
    %203 = arith.cmpf oge, %201, %202 : vector<16x16xf32>
    %cst_77 = arith.constant 2.000000e-01 : f32
    %204 = vector.broadcast %cst_77 : f32 to vector<16x16xf32>
    %205 = arith.mulf %204, %201 : vector<16x16xf32>
    %206 = arith.select %203, %201, %205 : vector<16x16xi1>, vector<16x16xf32>
    %cst_78 = arith.constant dense<0xFF800000> : vector<16xf32>
    %207 = vector.multi_reduction <maximumf>, %206, %cst_78 [1] : vector<16x16xf32> to vector<16xf32>
    %208 = vector.shape_cast %207 : vector<16xf32> to vector<16x1xf32>
    %209 = vector.broadcast %208 : vector<16x1xf32> to vector<16x16xf32>
    %210 = arith.subf %206, %209 : vector<16x16xf32>
    %211 = math.exp %210 : vector<16x16xf32>
    %cst_79 = arith.constant dense<0.000000e+00> : vector<16xf32>
    %212 = vector.multi_reduction <add>, %211, %cst_79 [1] : vector<16x16xf32> to vector<16xf32>
    %213 = vector.shape_cast %212 : vector<16xf32> to vector<16x1xf32>
    %214 = tpu.reciprocal %213 {approx = true} : vector<16x1xf32> -> vector<16x1xf32>
    %215 = vector.broadcast %214 : vector<16x1xf32> to vector<16x16xf32>
    %216 = arith.mulf %211, %215 : vector<16x16xf32>
    %217 = tpu.concatenate %147, %170, %193, %216 in 1 : vector<16x16xf32>, vector<16x16xf32>, vector<16x16xf32>, vector<16x16xf32> -> vector<16x64xf32>
    %218 = vector.extract_strided_slice %120 {offsets = [0, 0], sizes = [16, 32], strides = [1, 1]} : vector<16x128xf32> to vector<16x32xf32>
    %219 = vector.extract_strided_slice %120 {offsets = [0, 32], sizes = [16, 32], strides = [1, 1]} : vector<16x128xf32> to vector<16x32xf32>
    %220 = vector.extract_strided_slice %120 {offsets = [0, 64], sizes = [16, 32], strides = [1, 1]} : vector<16x128xf32> to vector<16x32xf32>
    %221 = vector.extract_strided_slice %120 {offsets = [0, 96], sizes = [16, 32], strides = [1, 1]} : vector<16x128xf32> to vector<16x32xf32>
    %222 = tpu.concatenate %218, %219, %220, %221 in 0 : vector<16x32xf32>, vector<16x32xf32>, vector<16x32xf32>, vector<16x32xf32> -> vector<64x32xf32>
    %cst_80 = arith.constant dense<0.000000e+00> : vector<16x32xf32>
    %223 = tpu.matmul %217, %222, %cst_80 {dimension_numbers = #tpu.dot_dimension_numbers<[1], [0], [0], [1], [0, 0, 1, 1], [], []>} : vector<16x64xf32>, vector<64x32xf32>, vector<16x32xf32> -> vector<16x32xf32>
    %cst_81 = arith.constant 2.500000e-01 : f32
    %224 = vector.broadcast %cst_81 : f32 to vector<16x32xf32>
    %225 = arith.mulf %223, %224 : vector<16x32xf32>
    %c0_82 = arith.constant 0 : index
    %c0_83 = arith.constant 0 : index
    %226 = vector.load %arg12[%c0_82, %c0_83] : memref<1x32xf32, #tpu.memory_space<vmem>>, vector<1x32xf32>
    %227 = vector.broadcast %226 : vector<1x32xf32> to vector<16x32xf32>
    %228 = arith.addf %225, %227 : vector<16x32xf32>
    %c0_84 = arith.constant 0 : index
    %c0_85 = arith.constant 0 : index
    %229 = vector.load %arg13[%c0_84, %c0_85] : memref<1x32xf32, #tpu.memory_space<vmem>>, vector<1x32xf32>
    %230 = vector.broadcast %229 : vector<1x32xf32> to vector<16x32xf32>
    %231 = arith.mulf %228, %230 : vector<16x32xf32>
    %c0_86 = arith.constant 0 : index
    %c0_87 = arith.constant 0 : index
    %232 = vector.load %arg14[%c0_86, %c0_87] : memref<1x32xf32, #tpu.memory_space<vmem>>, vector<1x32xf32>
    %233 = vector.broadcast %232 : vector<1x32xf32> to vector<16x32xf32>
    %234 = arith.addf %231, %233 : vector<16x32xf32>
    %cst_88 = arith.constant 0.000000e+00 : f32
    %235 = vector.broadcast %cst_88 : f32 to vector<16x32xf32>
    %236 = arith.maximumf %234, %235 : vector<16x32xf32>
    %c0_89 = arith.constant 0 : index
    %c0_90 = arith.constant 0 : index
    %237 = vector.load %arg15[%c0_89, %c0_90] : memref<32x64xf32, #tpu.memory_space<vmem>>, vector<32x64xf32>
    %cst_91 = arith.constant dense<0.000000e+00> : vector<16x64xf32>
    %238 = tpu.matmul %236, %237, %cst_91 {dimension_numbers = #tpu.dot_dimension_numbers<[1], [0], [0], [1], [0, 0, 1, 1], [], []>} : vector<16x32xf32>, vector<32x64xf32>, vector<16x64xf32> -> vector<16x64xf32>
    %c0_92 = arith.constant 0 : index
    %c0_93 = arith.constant 0 : index
    %239 = vector.load %arg16[%c0_92, %c0_93] : memref<4x64xf32, #tpu.memory_space<vmem>>, vector<4x64xf32>
    %cst_94 = arith.constant dense<0.000000e+00> : vector<4x16xf32>
    %240 = tpu.matmul %239, %238, %cst_94 {dimension_numbers = #tpu.dot_dimension_numbers<[1], [1], [0], [0], [0, 0, 1, 0], [], []>} : vector<4x64xf32>, vector<16x64xf32>, vector<4x16xf32> -> vector<4x16xf32>
    %c0_95 = arith.constant 0 : index
    %c0_96 = arith.constant 0 : index
    %241 = vector.load %arg17[%c0_95, %c0_96] : memref<64x4xf32, #tpu.memory_space<vmem>>, vector<64x4xf32>
    %cst_97 = arith.constant dense<0.000000e+00> : vector<16x4xf32>
    %242 = tpu.matmul %238, %241, %cst_97 {dimension_numbers = #tpu.dot_dimension_numbers<[1], [0], [0], [1], [0, 0, 1, 1], [], []>} : vector<16x64xf32>, vector<64x4xf32>, vector<16x4xf32> -> vector<16x4xf32>
    %243 = vector.extract_strided_slice %242 {offsets = [0, 0], sizes = [16, 1], strides = [1, 1]} : vector<16x4xf32> to vector<16x1xf32>
    %244 = vector.extract_strided_slice %240 {offsets = [0, 0], sizes = [1, 16], strides = [1, 1]} : vector<4x16xf32> to vector<1x16xf32>
    %245 = vector.broadcast %243 : vector<16x1xf32> to vector<16x16xf32>
    %246 = vector.broadcast %244 : vector<1x16xf32> to vector<16x16xf32>
    %247 = arith.addf %245, %246 : vector<16x16xf32>
    %c0_98 = arith.constant 0 : index
    %c0_99 = arith.constant 0 : index
    %c0_100 = arith.constant 0 : index
    %248 = vector.load %arg18[%c0_98, %c0_99, %c0_100] : memref<4x16x16xf32, #tpu.memory_space<vmem>>, vector<1x16x16xf32>
    %249 = vector.shape_cast %248 : vector<1x16x16xf32> to vector<16x16xf32>
    %250 = arith.addf %247, %249 : vector<16x16xf32>
    %cst_101 = arith.constant 0.000000e+00 : f32
    %251 = vector.broadcast %cst_101 : f32 to vector<16x16xf32>
    %252 = arith.cmpf oge, %250, %251 : vector<16x16xf32>
    %cst_102 = arith.constant 2.000000e-01 : f32
    %253 = vector.broadcast %cst_102 : f32 to vector<16x16xf32>
    %254 = arith.mulf %253, %250 : vector<16x16xf32>
    %255 = arith.select %252, %250, %254 : vector<16x16xi1>, vector<16x16xf32>
    %cst_103 = arith.constant dense<0xFF800000> : vector<16xf32>
    %256 = vector.multi_reduction <maximumf>, %255, %cst_103 [1] : vector<16x16xf32> to vector<16xf32>
    %257 = vector.shape_cast %256 : vector<16xf32> to vector<16x1xf32>
    %258 = vector.broadcast %257 : vector<16x1xf32> to vector<16x16xf32>
    %259 = arith.subf %255, %258 : vector<16x16xf32>
    %260 = math.exp %259 : vector<16x16xf32>
    %cst_104 = arith.constant dense<0.000000e+00> : vector<16xf32>
    %261 = vector.multi_reduction <add>, %260, %cst_104 [1] : vector<16x16xf32> to vector<16xf32>
    %262 = vector.shape_cast %261 : vector<16xf32> to vector<16x1xf32>
    %263 = tpu.reciprocal %262 {approx = true} : vector<16x1xf32> -> vector<16x1xf32>
    %264 = vector.broadcast %263 : vector<16x1xf32> to vector<16x16xf32>
    %265 = arith.mulf %260, %264 : vector<16x16xf32>
    %266 = vector.extract_strided_slice %242 {offsets = [0, 1], sizes = [16, 1], strides = [1, 1]} : vector<16x4xf32> to vector<16x1xf32>
    %267 = vector.extract_strided_slice %240 {offsets = [1, 0], sizes = [1, 16], strides = [1, 1]} : vector<4x16xf32> to vector<1x16xf32>
    %268 = vector.broadcast %266 : vector<16x1xf32> to vector<16x16xf32>
    %269 = vector.broadcast %267 : vector<1x16xf32> to vector<16x16xf32>
    %270 = arith.addf %268, %269 : vector<16x16xf32>
    %c1_105 = arith.constant 1 : index
    %c0_106 = arith.constant 0 : index
    %c0_107 = arith.constant 0 : index
    %271 = vector.load %arg18[%c1_105, %c0_106, %c0_107] : memref<4x16x16xf32, #tpu.memory_space<vmem>>, vector<1x16x16xf32>
    %272 = vector.shape_cast %271 : vector<1x16x16xf32> to vector<16x16xf32>
    %273 = arith.addf %270, %272 : vector<16x16xf32>
    %cst_108 = arith.constant 0.000000e+00 : f32
    %274 = vector.broadcast %cst_108 : f32 to vector<16x16xf32>
    %275 = arith.cmpf oge, %273, %274 : vector<16x16xf32>
    %cst_109 = arith.constant 2.000000e-01 : f32
    %276 = vector.broadcast %cst_109 : f32 to vector<16x16xf32>
    %277 = arith.mulf %276, %273 : vector<16x16xf32>
    %278 = arith.select %275, %273, %277 : vector<16x16xi1>, vector<16x16xf32>
    %cst_110 = arith.constant dense<0xFF800000> : vector<16xf32>
    %279 = vector.multi_reduction <maximumf>, %278, %cst_110 [1] : vector<16x16xf32> to vector<16xf32>
    %280 = vector.shape_cast %279 : vector<16xf32> to vector<16x1xf32>
    %281 = vector.broadcast %280 : vector<16x1xf32> to vector<16x16xf32>
    %282 = arith.subf %278, %281 : vector<16x16xf32>
    %283 = math.exp %282 : vector<16x16xf32>
    %cst_111 = arith.constant dense<0.000000e+00> : vector<16xf32>
    %284 = vector.multi_reduction <add>, %283, %cst_111 [1] : vector<16x16xf32> to vector<16xf32>
    %285 = vector.shape_cast %284 : vector<16xf32> to vector<16x1xf32>
    %286 = tpu.reciprocal %285 {approx = true} : vector<16x1xf32> -> vector<16x1xf32>
    %287 = vector.broadcast %286 : vector<16x1xf32> to vector<16x16xf32>
    %288 = arith.mulf %283, %287 : vector<16x16xf32>
    %289 = vector.extract_strided_slice %242 {offsets = [0, 2], sizes = [16, 1], strides = [1, 1]} : vector<16x4xf32> to vector<16x1xf32>
    %290 = vector.extract_strided_slice %240 {offsets = [2, 0], sizes = [1, 16], strides = [1, 1]} : vector<4x16xf32> to vector<1x16xf32>
    %291 = vector.broadcast %289 : vector<16x1xf32> to vector<16x16xf32>
    %292 = vector.broadcast %290 : vector<1x16xf32> to vector<16x16xf32>
    %293 = arith.addf %291, %292 : vector<16x16xf32>
    %c2_112 = arith.constant 2 : index
    %c0_113 = arith.constant 0 : index
    %c0_114 = arith.constant 0 : index
    %294 = vector.load %arg18[%c2_112, %c0_113, %c0_114] : memref<4x16x16xf32, #tpu.memory_space<vmem>>, vector<1x16x16xf32>
    %295 = vector.shape_cast %294 : vector<1x16x16xf32> to vector<16x16xf32>
    %296 = arith.addf %293, %295 : vector<16x16xf32>
    %cst_115 = arith.constant 0.000000e+00 : f32
    %297 = vector.broadcast %cst_115 : f32 to vector<16x16xf32>
    %298 = arith.cmpf oge, %296, %297 : vector<16x16xf32>
    %cst_116 = arith.constant 2.000000e-01 : f32
    %299 = vector.broadcast %cst_116 : f32 to vector<16x16xf32>
    %300 = arith.mulf %299, %296 : vector<16x16xf32>
    %301 = arith.select %298, %296, %300 : vector<16x16xi1>, vector<16x16xf32>
    %cst_117 = arith.constant dense<0xFF800000> : vector<16xf32>
    %302 = vector.multi_reduction <maximumf>, %301, %cst_117 [1] : vector<16x16xf32> to vector<16xf32>
    %303 = vector.shape_cast %302 : vector<16xf32> to vector<16x1xf32>
    %304 = vector.broadcast %303 : vector<16x1xf32> to vector<16x16xf32>
    %305 = arith.subf %301, %304 : vector<16x16xf32>
    %306 = math.exp %305 : vector<16x16xf32>
    %cst_118 = arith.constant dense<0.000000e+00> : vector<16xf32>
    %307 = vector.multi_reduction <add>, %306, %cst_118 [1] : vector<16x16xf32> to vector<16xf32>
    %308 = vector.shape_cast %307 : vector<16xf32> to vector<16x1xf32>
    %309 = tpu.reciprocal %308 {approx = true} : vector<16x1xf32> -> vector<16x1xf32>
    %310 = vector.broadcast %309 : vector<16x1xf32> to vector<16x16xf32>
    %311 = arith.mulf %306, %310 : vector<16x16xf32>
    %312 = vector.extract_strided_slice %242 {offsets = [0, 3], sizes = [16, 1], strides = [1, 1]} : vector<16x4xf32> to vector<16x1xf32>
    %313 = vector.extract_strided_slice %240 {offsets = [3, 0], sizes = [1, 16], strides = [1, 1]} : vector<4x16xf32> to vector<1x16xf32>
    %314 = vector.broadcast %312 : vector<16x1xf32> to vector<16x16xf32>
    %315 = vector.broadcast %313 : vector<1x16xf32> to vector<16x16xf32>
    %316 = arith.addf %314, %315 : vector<16x16xf32>
    %c3_119 = arith.constant 3 : index
    %c0_120 = arith.constant 0 : index
    %c0_121 = arith.constant 0 : index
    %317 = vector.load %arg18[%c3_119, %c0_120, %c0_121] : memref<4x16x16xf32, #tpu.memory_space<vmem>>, vector<1x16x16xf32>
    %318 = vector.shape_cast %317 : vector<1x16x16xf32> to vector<16x16xf32>
    %319 = arith.addf %316, %318 : vector<16x16xf32>
    %cst_122 = arith.constant 0.000000e+00 : f32
    %320 = vector.broadcast %cst_122 : f32 to vector<16x16xf32>
    %321 = arith.cmpf oge, %319, %320 : vector<16x16xf32>
    %cst_123 = arith.constant 2.000000e-01 : f32
    %322 = vector.broadcast %cst_123 : f32 to vector<16x16xf32>
    %323 = arith.mulf %322, %319 : vector<16x16xf32>
    %324 = arith.select %321, %319, %323 : vector<16x16xi1>, vector<16x16xf32>
    %cst_124 = arith.constant dense<0xFF800000> : vector<16xf32>
    %325 = vector.multi_reduction <maximumf>, %324, %cst_124 [1] : vector<16x16xf32> to vector<16xf32>
    %326 = vector.shape_cast %325 : vector<16xf32> to vector<16x1xf32>
    %327 = vector.broadcast %326 : vector<16x1xf32> to vector<16x16xf32>
    %328 = arith.subf %324, %327 : vector<16x16xf32>
    %329 = math.exp %328 : vector<16x16xf32>
    %cst_125 = arith.constant dense<0.000000e+00> : vector<16xf32>
    %330 = vector.multi_reduction <add>, %329, %cst_125 [1] : vector<16x16xf32> to vector<16xf32>
    %331 = vector.shape_cast %330 : vector<16xf32> to vector<16x1xf32>
    %332 = tpu.reciprocal %331 {approx = true} : vector<16x1xf32> -> vector<16x1xf32>
    %333 = vector.broadcast %332 : vector<16x1xf32> to vector<16x16xf32>
    %334 = arith.mulf %329, %333 : vector<16x16xf32>
    %335 = tpu.concatenate %265, %288, %311, %334 in 1 : vector<16x16xf32>, vector<16x16xf32>, vector<16x16xf32>, vector<16x16xf32> -> vector<16x64xf32>
    %336 = vector.extract_strided_slice %238 {offsets = [0, 0], sizes = [16, 16], strides = [1, 1]} : vector<16x64xf32> to vector<16x16xf32>
    %337 = vector.extract_strided_slice %238 {offsets = [0, 16], sizes = [16, 16], strides = [1, 1]} : vector<16x64xf32> to vector<16x16xf32>
    %338 = vector.extract_strided_slice %238 {offsets = [0, 32], sizes = [16, 16], strides = [1, 1]} : vector<16x64xf32> to vector<16x16xf32>
    %339 = vector.extract_strided_slice %238 {offsets = [0, 48], sizes = [16, 16], strides = [1, 1]} : vector<16x64xf32> to vector<16x16xf32>
    %340 = tpu.concatenate %336, %337, %338, %339 in 0 : vector<16x16xf32>, vector<16x16xf32>, vector<16x16xf32>, vector<16x16xf32> -> vector<64x16xf32>
    %cst_126 = arith.constant dense<0.000000e+00> : vector<16x16xf32>
    %341 = tpu.matmul %335, %340, %cst_126 {dimension_numbers = #tpu.dot_dimension_numbers<[1], [0], [0], [1], [0, 0, 1, 1], [], []>} : vector<16x64xf32>, vector<64x16xf32>, vector<16x16xf32> -> vector<16x16xf32>
    %cst_127 = arith.constant 2.500000e-01 : f32
    %342 = vector.broadcast %cst_127 : f32 to vector<16x16xf32>
    %343 = arith.mulf %341, %342 : vector<16x16xf32>
    %c0_128 = arith.constant 0 : index
    %c0_129 = arith.constant 0 : index
    %344 = vector.load %arg19[%c0_128, %c0_129] : memref<1x16xf32, #tpu.memory_space<vmem>>, vector<1x16xf32>
    %345 = vector.broadcast %344 : vector<1x16xf32> to vector<16x16xf32>
    %346 = arith.addf %343, %345 : vector<16x16xf32>
    %c0_130 = arith.constant 0 : index
    %c0_131 = arith.constant 0 : index
    %347 = vector.load %arg20[%c0_130, %c0_131] : memref<1x16xf32, #tpu.memory_space<vmem>>, vector<1x16xf32>
    %348 = vector.broadcast %347 : vector<1x16xf32> to vector<16x16xf32>
    %349 = arith.mulf %346, %348 : vector<16x16xf32>
    %c0_132 = arith.constant 0 : index
    %c0_133 = arith.constant 0 : index
    %350 = vector.load %arg21[%c0_132, %c0_133] : memref<1x16xf32, #tpu.memory_space<vmem>>, vector<1x16xf32>
    %351 = vector.broadcast %350 : vector<1x16xf32> to vector<16x16xf32>
    %352 = arith.addf %349, %351 : vector<16x16xf32>
    %c0_134 = arith.constant 0 : index
    %c0_135 = arith.constant 0 : index
    %353 = vector.load %arg22[%c0_134, %c0_135] : memref<16x16xf32, #tpu.memory_space<vmem>>, vector<16x16xf32>
    tpu.vector_store %arg22[%c0_134, %c0_135], %352 {strides = array<i32>} : memref<16x16xf32, #tpu.memory_space<vmem>>, vector<16x16xf32>,
    return
  }
}

</mosaic_0001>

<bundles_post_ra>
// kernel: tpu_custom_call.1
= control target key start
LH: loop header
LB: loop body
LE: loop exit
PB: predicated region body
PF: predicated region fallthrough
CT: control target
= control target key end

     0   :  { %s3196_s0 = inlined_call_operand.vmem [shape: f32[16,8], index: 0, kind: input, shape index: {}]   ;;  %s3197_s1 = inlined_call_operand.vmem [shape: f32[8,128], index: 1, kind: input, shape index: {}]   ;;  %s3198_s2 = inlined_call_operand.vmem [shape: f32[4,128], index: 2, kind: input, shape index: {}]   ;;  %s3199_s3 = inlined_call_operand.vmem [shape: f32[128,4], index: 3, kind: input, shape index: {}]   ;;  %s3200_s4 = inlined_call_operand.vmem [shape: f32[4,16,16], index: 4, kind: input, shape index: {}]   ;;  %s3201_s5 = inlined_call_operand.vmem [shape: f32[1,32], index: 5, kind: input, shape index: {}]   ;;  %s3202_s6 = inlined_call_operand.vmem [shape: f32[1,32], index: 6, kind: input, shape index: {}]   ;;  %s3203_s7 = inlined_call_operand.vmem [shape: f32[1,32], index: 7, kind: input, shape index: {}]   ;;  %s3204_s8 = inlined_call_operand.vmem [shape: f32[32,128], index: 8, kind: input, shape index: {}]   ;;  %s3205_s9 = inlined_call_operand.vmem [shape: f32[4,128], index: 9, kind: input, shape index: {}]   ;;  %s3206_s10 = inlined_call_operand.vmem [shape: f32[128,4], index: 10, kind: input, shape index: {}]   ;;  %s3207_s11 = inlined_call_operand.vmem [shape: f32[4,16,16], index: 11, kind: input, shape index: {}]   ;;  %s3208_s12 = inlined_call_operand.vmem [shape: f32[1,32], index: 12, kind: input, shape index: {}]   ;;  %s3209_s13 = inlined_call_operand.vmem [shape: f32[1,32], index: 13, kind: input, shape index: {}]   ;;  %s3210_s14 = inlined_call_operand.vmem [shape: f32[1,32], index: 14, kind: input, shape index: {}]   ;;  %s3211_s15 = inlined_call_operand.vmem [shape: f32[32,64], index: 15, kind: input, shape index: {}]   ;;  %s3212_s16 = inlined_call_operand.vmem [shape: f32[4,64], index: 16, kind: input, shape index: {}]   ;;  %s3213_s17 = inlined_call_operand.vmem [shape: f32[64,4], index: 17, kind: input, shape index: {}]   ;;  %s3214_s18 = inlined_call_operand.vmem [shape: f32[4,16,16], index: 18, kind: input, shape index: {}]   ;;  %s3215_s19 = inlined_call_operand.vmem [shape: f32[1,16], index: 19, kind: input, shape index: {}]   ;;  %s3216_s20 = inlined_call_operand.vmem [shape: f32[1,16], index: 20, kind: input, shape index: {}]   ;;  %s3217_s21 = inlined_call_operand.vmem [shape: f32[1,16], index: 21, kind: input, shape index: {}]   ;;  %s3218_s22 = inlined_call_operand.hbm [shape: f32[16,16], index: 22, kind: output, shape index: {}]  }
   0x1   :  { %3222 = sst [smem:[#allocation5_spill]] %s3196_s0 }
   0x2   :  { %3223 = sst [smem:[#allocation6_spill]] %s3197_s1 }
   0x3   :  { %3224 = sst [smem:[#allocation7_spill]] %s3198_s2 }
   0x4   :  { %3225 = sst [smem:[#allocation8_spill]] %s3199_s3 }
   0x5   :  { %3226 = sst [smem:[#allocation9_spill]] %s3200_s4 }
   0x6   :  { %3227 = sst [smem:[#allocation10_spill]] %s3201_s5 }
   0x7   :  { %3228 = sst [smem:[#allocation11_spill]] %s3202_s6 }
   0x8   :  { %3229 = sst [smem:[#allocation12_spill]] %s3212_s16 }
   0x9   :  { %s3230_s29 = sld [smem:[#allocation6_spill]]  ;;  %s3231_s16 = sld [smem:[#allocation5_spill]]  ;;  %vm75_vm0 = vcmask 64512  }
   0xa   :  { %s3232_s24 = sld [smem:[#allocation8_spill]] }
   0xf   :  { %v74_v0 = vld [vmem:[%s3230_s29] sm:$0xff]  ;;  %v73_v2 = vld [vmem:[%s3231_s16 + $0x8] sm:$0xff] }
  0x10   :  { %v72_v1 = vld [vmem:[%s3231_s16] sm:$0xff]  ;;  %2029 = vmatprep.subr.mxu0 %v74_v0  ;;  %v229_v4 = vld [vmem:[%s3232_s24 + $0x8] sm:$0xff]  ;;  %v230_v5 = vld [vmem:[%s3232_s24 + $0x10] sm:$0xff] }
  0x11   :  { %2031 = vmatprep.mubr.msk.f32.mxu0 %vm75_vm0, %v72_v1  ;;  %v228_v3 = vld [vmem:[%s3232_s24] sm:$0xff]  ;;  %2030 = vmatpush3.msra.mxu0 %v74_v0  ;;  %v231_v7 = vld [vmem:[%s3232_s24 + $0x18] sm:$0xff]  ;;  %v233_v10 = vld [vmem:[%s3232_s24 + $0x28] sm:$0xff] }
  0x12   :  { %v2226_v6 = vpack.c.bf16 %v229_v4, %v228_v3  ;;  %2032 = vmatmul.mubr.msk.f32.vlgmr.msra.gmra.mrb[0].mxu0 %vm75_vm0, %v73_v2  ;;  %v2230_v8 = vpack.c.bf16 %v231_v7, %v230_v5  ;;  %v232_v9 = vld [vmem:[%s3232_s24 + $0x20] sm:$0xff] }
  0x13   :  { %v2234_v11 = vpack.c.bf16 %v233_v10, %v232_v9 }
  0x14   :  { %2227 = vmatprep.subr.bf16.mxu0 %v2226_v6 }
  0x15   :  { %2229 = vmatpush3.bf16.msra.mxu0 %v2226_v6 }
  0x16   :  { %2231 = vmatprep.subr.bf16.mxu0 %v2230_v8 }
  0x17   :  { %27 = vsyncpa [#allocation3], 0  ;;  %v234_v12 = vld [vmem:[%s3232_s24 + $0x30] sm:$0xff]  ;;  %v235_v13 = vld [vmem:[%s3232_s24 + $0x38] sm:$0xff]  ;;  %v2582_v27 = vmov 0.0|0.0   ;;  %vm2583_vm1 = vmmov 0   ;;  %v329_v42 = vlaneseq }
  0x18   :  { %v2238_v14 = vpack.c.bf16 %v235_v13, %v234_v12  ;;  %v236_v15 = vld [vmem:[%s3232_s24 + $0x40] sm:$0xff]  ;;  %v237_v16 = vld [vmem:[%s3232_s24 + $0x48] sm:$0xff]  ;;  %v238_v18 = vld [vmem:[%s3232_s24 + $0x50] sm:$0xff]  ;;  %2223 = vmatprep.subr.bf16.mxu1 %v2582_v27  ;;  %v2584_v28 = vmov 0.0   ;;  %v2585_v29 = vmov 2   ;;  %v2586_v30 = vmov 1  }
  0x19   :  { %2233 = vmatpush3.bf16.msra.mxu0 %v2230_v8  ;;  %v2242_v17 = vpack.c.bf16 %v237_v16, %v236_v15  ;;  %v239_v19 = vld [vmem:[%s3232_s24 + $0x58] sm:$0xff]  ;;  %v240_v21 = vld [vmem:[%s3232_s24 + $0x60] sm:$0xff]  ;;  %v241_v22 = vld [vmem:[%s3232_s24 + $0x68] sm:$0xff]  ;;  %2038 = vmatprep.mubr.msk.f32.mxu1 %vm2583_vm1, %v2584_v28  ;;  %s3233_s25 = sld [smem:[#allocation7_spill]]  ;;  %v2587_v39 = vmov 3   ;;  %v2588_v41 = vmov 0  }
  0x1a   :  { %2235 = vmatprep.subr.bf16.mxu0 %v2234_v11  ;;  %v2246_v20 = vpack.c.bf16 %v239_v19, %v238_v18  ;;  %v2250_v23 = vpack.c.bf16 %v241_v22, %v240_v21  ;;  %v242_v24 = vld [vmem:[%s3232_s24 + $0x70] sm:$0xff]  ;;  %v243_v25 = vld [vmem:[%s3232_s24 + $0x78] sm:$0xff]  ;;  %2395 = vset.pattern.permute.xlu1 %v2585_v29  ;;  %v330_v43 = vshrl.u32 %v329_v42, 7  ;;  %s3234_s27 = sld [smem:[#allocation9_spill]]  ;;  %vm345_vm2 = vcmask 130048   ;;  %s2589_s2 = smov 96  }
  0x1b   :  { %v2254_v26 = vpack.c.bf16 %v243_v25, %v242_v24  ;;  %2394 = vset.pattern.permute.xlu0 %v2586_v30  ;;  %s2591_s3 = smov 64   ;;  %s2592_s16 = smov 16   ;;  %vm535_vm11 = vcmask 261120   ;;  %vm538_vm12 = vcmask 392192   ;;  %vm561_vm13 = vcmask 523264  }
  0x1c   :  { %v2789_v44 = vsub.s32 2, %v330_v43  ;;  %v2791_v45 = vsub.s32 1, %v330_v43  ;;  %v2809_v60 = vsub.s32 3, %v330_v43  ;;  %v2820_v12 = vsub.s32 0, %v330_v43  ;;  %s2593_s28 = smov 48   ;;  %s3235_s5 = sld [smem:[#allocation10_spill]] }
  0x1d   :  { %2237 = vmatpush3.bf16.msra.mxu0 %v2234_v11  ;;  %s2595_s24 = smov 80  }
  0x1e   :  { %2239 = vmatprep.subr.bf16.mxu0 %v2238_v14 }
  0x1f   :  { %v157_v35 = vld [vmem:[%s3233_s25] sm:$0xf]  ;;  %s3236_s25 = sld [smem:[#allocation11_spill]] }
  0x20   :  { %v1890_v48 = vld [vmem:[%s3234_s27 + $0x28] sm:$0xff]  ;;  %v1888_v50 = vld [vmem:[%s3234_s27 + $0x18] sm:$0xff]  ;;  %v1889_v56 = vld [vmem:[%s3234_s27 + $0x20] sm:$0xff] }
  0x21   :  { %2241 = vmatpush3.bf16.msra.mxu0 %v2238_v14  ;;  %v1887_v58 = vld [vmem:[%s3234_s27 + $0x10] sm:$0xff]  ;;  %v1892_v6 = vld [vmem:[%s3234_s27 + $0x38] sm:$0xff]  ;;  %v335_v21 = vld [vmem:[%s3234_s27] sm:$0xff] }
  0x22   :  { %2243 = vmatprep.subr.bf16.mxu0 %v2242_v17  ;;  %v1891_v8 = vld [vmem:[%s3234_s27 + $0x30] sm:$0xff] }
  0x25   :  { %2245 = vmatpush3.bf16.msra.mxu0 %v2242_v17 }
  0x26   :  { %2247 = vmatprep.subr.bf16.mxu0 %v2246_v20 }
  0x29   :  { %2249 = vmatpush3.bf16.msra.mxu0 %v2246_v20 }
  0x2a   :  { %2251 = vmatprep.subr.bf16.mxu0 %v2250_v23 }
  0x2d   :  { %2253 = vmatpush3.bf16.msra.mxu0 %v2250_v23  ;;  %v336_v23 = vld [vmem:[%s3234_s27 + $0x8] sm:$0xff]  ;;  %s2590_s27 = smov 32  }
  0x2e   :  { %2255 = vmatprep.subr.bf16.mxu0 %v2254_v26 }
  0x31   :  { %2257 = vmatpush3.bf16.msra.mxu0 %v2254_v26 }
  0xe5   :  { %v2033_v31 = vpop.f32.mrb[0].mxu0 }
  0xe6   :  { %v148_v32 = vpop.f32.mrb[1].mxu0 }
  0xe7   :  { %2073 = vmatprep.mubr.f32.mxu0 %v148_v32  ;;  %v2224_v33 = vpack.c.bf16 %v2033_v31, %v148_v32  ;;  %v2776_v34 = vpack.i.bf16 %v2033_v31, %v148_v32 }
  0xe8   :  { %2074 = vmatmul.mubr.f32.vlgmr.msra.gmra.mrb[2].mxu0 %v2033_v31 }
  0xe9   :  { %2225 = vmatpush3.bf16.xpose.msra.mxu1 %v2224_v33 }
  0xea   :  { %2259 = vmatprep.subr.bf16.mxu1 %v2224_v33 }
  0xf0   :  { %2039 = vmatmul.mubr.f32.vlgmr.msra.gmra.mrb[0].mxu1 %v157_v35 }
  0xf1   :  { %2261 = vmatpush3.bf16.msra.mxu1 %v2224_v33 }
 0x1bb   :  { %v2075_v36 = vpop.f32.mrb[2].mxu0 }
 0x1bc   :  { %420 = vperm.xlu1 %2395, %v2075_v36   ;;  %373 = vperm.xlu0 %2394, %v2075_v36   ;;  %v310_v37 = vpop.f32.mrb[3].mxu0 }
 0x1c0   :  { %416 = vperm.xlu1 %2395, %v310_v37   ;;  %369 = vperm.xlu0 %2394, %v310_v37  }
 0x1c3   :  { %v2781_v38 = vpop.f32.mrb[0].mxu1 }
 0x1c4   :  { %2397 = vset.pattern.permute.xlu1 %v2587_v39  ;;  %2396 = vset.pattern.permute.xlu0 %v2587_v39  ;;  %v2040_v40 = vpop.f32.mrb[1].mxu1  ;;  %v426_v46 = vrot.slane %v2781_v38, %v2789_v44  ;;  %v379_v47 = vrot.slane %v2781_v38, %v2791_v45  ;;  %v473_v4 = vrot.slane %v2781_v38, %v2809_v60 }
 0x1c5   :  { %467 = vperm.xlu1 %2397, %v2075_v36   ;;  %463 = vperm.xlu0 %2396, %v310_v37   ;;  %v332_v22 = vrot.slane %v2781_v38, %v2820_v12 }
 0x1c9   :  { %2399 = vset.pattern.permute.xlu1 %v2588_v41  ;;  %2398 = vset.pattern.permute.xlu0 %v2588_v41 }
 0x1ca   :  { %321 = vperm.xlu1 %2399, %v310_v37   ;;  %326 = vperm.xlu0 %2398, %v2075_v36  }
 0x1ce   :  { %2416 = vset.pattern.permute.xlu1 %v2585_v29  ;;  %2415 = vset.pattern.permute.xlu0 %v2586_v30 }
 0x23b   :  { %v421_v49 = vpop.permute.xlu1 %420  ;;  %v374_v51 = vpop.permute.xlu0 %373 }
 0x23c   :  { %v428_v52 = vadd.f32 %v426_v46, %v421_v49  ;;  %v381_v53 = vadd.f32 %v379_v47, %v374_v51 }
 0x23e   :  { %v433_v54 = vadd.f32 %v1890_v48, %v428_v52  ;;  %v386_v55 = vadd.f32 %v1888_v50, %v381_v53 }
 0x23f   :  { %v417_v57 = vpop.permute.xlu1 %416  ;;  %v370_v59 = vpop.permute.xlu0 %369 }
 0x240   :  { %v427_v61 = vadd.f32 %v426_v46, %v417_v57  ;;  %v380_v62 = vadd.f32 %v379_v47, %v370_v59  ;;  %vm388_vm3 = vcmp.ge.f32.partialorder %v386_v55, 0.0  ;;  %v390_v63 = vmul.f32 0.2, %v386_v55 }
 0x241   :  { %vm435_vm4 = vcmp.ge.f32.partialorder %v433_v54, 0.0  ;;  %v437_v0 = vmul.f32 0.2, %v433_v54 }
 0x242   :  { %v432_v1 = vadd.f32 %v1889_v56, %v427_v61  ;;  %v385_v2 = vadd.f32 %v1887_v58, %v380_v62  ;;  %v392_v3 = vsel %vm388_vm3, %v386_v55, %v390_v63 }
 0x243   :  { %v396_v5 = vsel %vm345_vm2, %v392_v3, -inf  ;;  %v439_v10 = vsel %vm435_vm4, %v433_v54, %v437_v0 }
 0x244   :  { %v468_v7 = vpop.permute.xlu1 %467  ;;  %v464_v9 = vpop.permute.xlu0 %463  ;;  %397 = vmax.xlane.f32.xlu0 %v396_v5  ;;  %vm387_vm5 = vcmp.ge.f32.partialorder %v385_v2, 0.0  ;;  %v389_v11 = vmul.f32 0.2, %v385_v2  ;;  %vm434_vm6 = vcmp.ge.f32.partialorder %v432_v1, 0.0  ;;  %v436_v15 = vmul.f32 0.2, %v432_v1 }
 0x245   :  { %v475_v13 = vadd.f32 %v473_v4, %v468_v7  ;;  %v474_v14 = vadd.f32 %v473_v4, %v464_v9  ;;  %v443_v19 = vsel %vm345_vm2, %v439_v10, -inf }
 0x246   :  { %v391_v16 = vsel %vm387_vm5, %v385_v2, %v389_v11  ;;  %v438_v24 = vsel %vm434_vm6, %v432_v1, %v436_v15 }
 0x247   :  { %v480_v17 = vadd.f32 %v1892_v6, %v475_v13  ;;  %v479_v18 = vadd.f32 %v1891_v8, %v474_v14  ;;  %v393_v20 = vsel %vm345_vm2, %v391_v16, -inf  ;;  %v440_v36 = vsel %vm345_vm2, %v438_v24, -inf }
 0x248   :  { %444 = vmax.xlane.f32.xlu0 %v443_v19  ;;  %394 = vmax.xlane.f32.xlu1 %v393_v20 }
 0x249   :  { %v322_v25 = vpop.permute.xlu1 %321  ;;  %v327_v26 = vpop.permute.xlu0 %326  ;;  %vm482_vm7 = vcmp.ge.f32.partialorder %v480_v17, 0.0  ;;  %v484_v31 = vmul.f32 0.2, %v480_v17  ;;  %vm481_vm8 = vcmp.ge.f32.partialorder %v479_v18, 0.0  ;;  %v483_v32 = vmul.f32 0.2, %v479_v18 }
 0x24a   :  { %v333_v33 = vadd.f32 %v332_v22, %v322_v25  ;;  %v334_v35 = vadd.f32 %v332_v22, %v327_v26 }
 0x24b   :  { %v486_v37 = vsel %vm482_vm7, %v480_v17, %v484_v31  ;;  %v485_v43 = vsel %vm481_vm8, %v479_v18, %v483_v32  ;;  %vm2343_vm8 = vmpackc.low %vm561_vm13, %vm561_vm13 }
 0x24c   :  { %v337_v40 = vadd.f32 %v335_v21, %v333_v33  ;;  %v338_v42 = vadd.f32 %v336_v23, %v334_v35  ;;  %441 = vmax.xlane.f32.xlu1 %v440_v36  ;;  %v490_v38 = vsel %vm345_vm2, %v486_v37, -inf  ;;  %v487_v48 = vsel %vm345_vm2, %v485_v43, -inf }
 0x24d   :  { %491 = vmax.xlane.f32.xlu0 %v490_v38 }
 0x24e   :  { %vm340_vm9 = vcmp.ge.f32.partialorder %v338_v42, 0.0  ;;  %v342_v46 = vmul.f32 0.2, %v338_v42  ;;  %vm339_vm10 = vcmp.ge.f32.partialorder %v337_v40, 0.0  ;;  %v341_v47 = vmul.f32 0.2, %v337_v40 }
 0x250   :  { %488 = vmax.xlane.f32.xlu1 %v487_v48  ;;  %v2835_v49 = vsel %vm340_vm9, %v338_v42, %v342_v46  ;;  %v2837_v50 = vsel %vm339_vm10, %v337_v40, %v341_v47 }
 0x251   :  { %v349_v51 = vsel %vm345_vm2, %v2835_v49, -inf  ;;  %v346_v52 = vsel %vm345_vm2, %v2837_v50, -inf }
 0x252   :  { %350 = vmax.xlane.f32.xlu0 %v349_v51 }
 0x254   :  { %347 = vmax.xlane.f32.xlu1 %v346_v52 }
 0x265   :  { %2401 = vrot.lane.b32.xlu1 %v2776_v34, %s2589_s2 }
 0x2d1   :  { %v398_v53 = vpop.xlane.xlu0 %397 }
 0x2d2   :  { %v400_v54 = vsub.f32 %v392_v3, %v398_v53 }
 0x2d4   :  { %v403_v55 = vmul.f32 1.442695, %v400_v54 }
 0x2d5   :  { %v445_v56 = vpop.xlane.xlu0 %444  ;;  %v395_v57 = vpop.xlane.xlu1 %394 }
 0x2d6   :  { %2462 = vpow2.f32 %v403_v55  ;;  %v447_v58 = vsub.f32 %v439_v10, %v445_v56  ;;  %v399_v59 = vsub.f32 %v391_v16, %v395_v57 }
 0x2d8   :  { %v450_v61 = vmul.f32 1.442695, %v447_v58  ;;  %v401_v62 = vmul.f32 1.442695, %v399_v59 }
 0x2d9   :  { %v442_v63 = vpop.xlane.xlu1 %441 }
 0x2da   :  { %2464 = vpow2.f32 %v450_v61  ;;  %v446_v0 = vsub.f32 %v438_v24, %v442_v63  ;;  %v492_v1 = vpop.xlane.xlu0 %491 }
 0x2db   :  { %2466 = vpow2.f32 %v401_v62  ;;  %v494_v2 = vsub.f32 %v486_v37, %v492_v1 }
 0x2dc   :  { %v448_v4 = vmul.f32 1.442695, %v446_v0 }
 0x2dd   :  { %v497_v5 = vmul.f32 1.442695, %v494_v2  ;;  %v489_v6 = vpop.xlane.xlu1 %488 }
 0x2de   :  { %2468 = vpow2.f32 %v448_v4  ;;  %v493_v7 = vsub.f32 %v485_v43, %v489_v6 }
 0x2df   :  { %2470 = vpow2.f32 %v497_v5  ;;  %v351_v26 = vpop.xlane.xlu0 %350 }
 0x2e0   :  { %v2463_v3 = vpop.eup %2462  ;;  %v495_v8 = vmul.f32 1.442695, %v493_v7  ;;  %v353_v31 = vsub.f32 %v2835_v49, %v351_v26  ;;  %v675_v26 = vld [vmem:[%s3204_s8 + $0x8] sm:$0xff] }
 0x2e1   :  { %v348_v9 = vpop.xlane.xlu1 %347  ;;  %v408_v10 = vsel %vm345_vm2, %v2463_v3, 0.0 }
 0x2e2   :  { %2472 = vpow2.f32 %v495_v8  ;;  %409 = vadd.xlane.f32.xlu0 %v408_v10  ;;  %v356_v32 = vmul.f32 1.442695, %v353_v31  ;;  %v352_v33 = vsub.f32 %v2837_v50, %v348_v9 }
 0x2e4   :  { %v2465_v11 = vpop.eup %2464  ;;  %2474 = vpow2.f32 %v356_v32  ;;  %v354_v35 = vmul.f32 1.442695, %v352_v33  ;;  %v676_v32 = vld [vmem:[%s3204_s8 + $0x10] sm:$0xff]  ;;  %v677_v33 = vld [vmem:[%s3204_s8 + $0x18] sm:$0xff] }
 0x2e5   :  { %v2467_v13 = vpop.eup %2466  ;;  %v2402_v14 = vpop.permute.xlu1 %2401  ;;  %v455_v15 = vsel %vm345_vm2, %v2465_v11, 0.0 }
 0x2e6   :  { %v2404_v16 = vunpack.i.h.bf16 %v2402_v14  ;;  %v2403_v17 = vunpack.i.l.bf16 %v2402_v14  ;;  %456 = vadd.xlane.f32.xlu0 %v455_v15  ;;  %v405_v18 = vsel %vm345_vm2, %v2467_v13, 0.0  ;;  %2476 = vpow2.f32 %v354_v35 }
 0x2e7   :  { %406 = vadd.xlane.f32.xlu1 %v405_v18  ;;  %v2278_v35 = vpack.c.bf16 %v677_v33, %v676_v32  ;;  %v1901_v33 = vld [vmem:[%s3207_s11 + $0x18] sm:$0xff] }
 0x2e8   :  { %v2848_v19 = vpop.eup %2468  ;;  %v2262_v20 = vpack.c.bf16 %v2404_v16, %v2403_v17 }
 0x2e9   :  { %v2850_v21 = vpop.eup %2470  ;;  %v452_v22 = vsel %vm345_vm2, %v2848_v19, 0.0 }
 0x2ea   :  { %2263 = vmatprep.subr.bf16.mxu1 %v2262_v20  ;;  %v502_v23 = vsel %vm345_vm2, %v2850_v21, 0.0 }
 0x2eb   :  { %453 = vadd.xlane.f32.xlu1 %v452_v22  ;;  %503 = vadd.xlane.f32.xlu0 %v502_v23 }
 0x2ec   :  { %v2856_v24 = vpop.eup %2472  ;;  %2265 = vmatpush3.bf16.msra.mxu1 %v2262_v20 }
 0x2ed   :  { %v499_v25 = vsel %vm345_vm2, %v2856_v24, 0.0 }
 0x2ee   :  { %v2475_v36 = vpop.eup %2474 }
 0x2ef   :  { %500 = vadd.xlane.f32.xlu1 %v499_v25  ;;  %v361_v37 = vsel %vm345_vm2, %v2475_v36, 0.0  ;;  %v674_v25 = vld [vmem:[%s3204_s8] sm:$0xff] }
 0x2f0   :  { %v2477_v40 = vpop.eup %2476  ;;  %v2274_v31 = vpack.c.bf16 %v675_v26, %v674_v25 }
 0x2f1   :  { %v358_v42 = vsel %vm345_vm2, %v2477_v40, 0.0 }
 0x300   :  { %2411 = vrot.lane.b32.xlu1 %v2776_v34, %s2590_s27 }
 0x301   :  { %2406 = vrot.lane.b32.xlu0 %v2776_v34, %s2591_s3 }
 0x320   :  { %362 = vadd.xlane.f32.xlu0 %v361_v37  ;;  %v831_v37 = vld [vmem:[%s3206_s10 + $0x8] sm:$0xff] }
 0x324   :  { %359 = vadd.xlane.f32.xlu1 %v358_v42 }
 0x36f   :  { %v410_v38 = vpop.xlane.xlu0 %409 }
 0x370   :  { %2478 = vrcp.f32 %v410_v38  ;;  %v833_v38 = vld [vmem:[%s3206_s10 + $0x18] sm:$0xff] }
 0x373   :  { %v457_v34 = vpop.xlane.xlu0 %456 }
 0x374   :  { %2480 = vrcp.f32 %v457_v34  ;;  %v407_v43 = vpop.xlane.xlu1 %406 }
 0x375   :  { %2482 = vrcp.f32 %v407_v43  ;;  %v834_v43 = vld [vmem:[%s3206_s10 + $0x20] sm:$0xff] }
 0x378   :  { %v454_v46 = vpop.xlane.xlu1 %453  ;;  %v504_v47 = vpop.xlane.xlu0 %503 }
 0x379   :  { %2484 = vrcp.f32 %v454_v46  ;;  %v835_v46 = vld [vmem:[%s3206_s10 + $0x28] sm:$0xff] }
 0x37a   :  { %v2479_v48 = vpop.eup %2478  ;;  %2486 = vrcp.f32 %v504_v47  ;;  %v2293_v47 = vpack.c.bf16 %v835_v46, %v834_v43  ;;  %v1900_v43 = vld [vmem:[%s3207_s11 + $0x10] sm:$0xff] }
 0x37b   :  { %v414_v49 = vmul.f32 %v2479_v48, %v2463_v3  ;;  %v836_v48 = vld [vmem:[%s3206_s10 + $0x30] sm:$0xff] }
 0x37c   :  { %v501_v50 = vpop.xlane.xlu1 %500  ;;  %v2407_v51 = vpop.permute.xlu0 %2406 }
 0x37d   :  { %2488 = vrcp.f32 %v501_v50  ;;  %v2409_v52 = vunpack.i.h.bf16 %v2407_v51  ;;  %v2408_v53 = vunpack.i.l.bf16 %v2407_v51  ;;  %513 = vrot.lane.b32.xlu0 %v414_v49, %s2592_s16  ;;  %v837_v49 = vld [vmem:[%s3206_s10 + $0x38] sm:$0xff]  ;;  %v838_v51 = vld [vmem:[%s3206_s10 + $0x40] sm:$0xff] }
 0x37e   :  { %v2481_v54 = vpop.eup %2480  ;;  %v2297_v50 = vpack.c.bf16 %v837_v49, %v836_v48 }
 0x37f   :  { %v2483_v55 = vpop.eup %2482  ;;  %v2266_v56 = vpack.c.bf16 %v2409_v52, %v2408_v53  ;;  %v461_v57 = vmul.f32 %v2481_v54, %v2465_v11  ;;  %v839_v52 = vld [vmem:[%s3206_s10 + $0x48] sm:$0xff]  ;;  %v840_v54 = vld [vmem:[%s3206_s10 + $0x50] sm:$0xff] }
 0x380   :  { %v2412_v58 = vpop.permute.xlu1 %2411  ;;  %v413_v59 = vmul.f32 %v2483_v55, %v2467_v13  ;;  %v2301_v53 = vpack.c.bf16 %v839_v52, %v838_v51  ;;  %v841_v55 = vld [vmem:[%s3206_s10 + $0x58] sm:$0xff]  ;;  %v1904_v52 = vld [vmem:[%s3207_s11 + $0x30] sm:$0xff] }
 0x381   :  { %v2414_v61 = vunpack.i.h.bf16 %v2412_v58  ;;  %v2413_v62 = vunpack.i.l.bf16 %v2412_v58  ;;  %521 = vrot.lane.b32.xlu0 %v461_v57, %s2590_s27  ;;  %2267 = vmatprep.subr.bf16.mxu1 %v2266_v56  ;;  %v842_v57 = vld [vmem:[%s3206_s10 + $0x60] sm:$0xff]  ;;  %v843_v58 = vld [vmem:[%s3206_s10 + $0x68] sm:$0xff] }
 0x382   :  { %511 = vrot.lane.b32.xlu1 %v413_v59, %s2592_s16  ;;  %2269 = vmatpush3.bf16.msra.mxu1 %v2266_v56  ;;  %v2305_v56 = vpack.c.bf16 %v841_v55, %v840_v54  ;;  %v2309_v59 = vpack.c.bf16 %v843_v58, %v842_v57  ;;  %v1902_v58 = vld [vmem:[%s3207_s11 + $0x20] sm:$0xff] }
 0x383   :  { %v2485_v63 = vpop.eup %2484  ;;  %v2270_v0 = vpack.c.bf16 %v2414_v61, %v2413_v62  ;;  %v844_v61 = vld [vmem:[%s3206_s10 + $0x70] sm:$0xff]  ;;  %v845_v62 = vld [vmem:[%s3206_s10 + $0x78] sm:$0xff] }
 0x384   :  { %v2487_v1 = vpop.eup %2486  ;;  %v460_v2 = vmul.f32 %v2485_v63, %v2848_v19  ;;  %v2313_v63 = vpack.c.bf16 %v845_v62, %v844_v61 }
 0x385   :  { %2271 = vmatprep.subr.bf16.mxu1 %v2270_v0  ;;  %v508_v4 = vmul.f32 %v2487_v1, %v2850_v21  ;;  %v1895_v1 = vld [vmem:[%s3235_s5] ss:$0 sm:$0xff] }
 0x386   :  { %519 = vrot.lane.b32.xlu1 %v460_v2, %s2590_s27  ;;  %2273 = vmatpush3.bf16.msra.mxu1 %v2270_v0 }
 0x387   :  { %v2489_v5 = vpop.eup %2488  ;;  %529 = vrot.lane.b32.xlu0 %v508_v4, %s2593_s28  ;;  %2275 = vmatprep.subr.bf16.mxu1 %v2274_v31 }
 0x388   :  { %v507_v6 = vmul.f32 %v2489_v5, %v2856_v24  ;;  %v1896_v5 = vld [vmem:[%s3236_s25] ss:$0 sm:$0xff] }
 0x38a   :  { %527 = vrot.lane.b32.xlu1 %v507_v6, %s2593_s28 }
 0x3ad   :  { %v363_v3 = vpop.xlane.xlu0 %362 }
 0x3b1   :  { %v360_v7 = vpop.xlane.xlu1 %359 }
 0x3b2   :  { %2490 = vrcp.f32 %v360_v7 }
 0x3b3   :  { %2492 = vrcp.f32 %v363_v3  ;;  %v1897_v3 = vld [vmem:[%s3203_s7] ss:$0 sm:$0xff] }
 0x3bc   :  { %v2491_v11 = vpop.eup %2490 }
 0x3bd   :  { %v2493_v13 = vpop.eup %2492  ;;  %v366_v15 = vmul.f32 %v2491_v11, %v2477_v40  ;;  %v832_v40 = vld [vmem:[%s3206_s10 + $0x10] sm:$0xff] }
 0x3be   :  { %v367_v16 = vmul.f32 %v2493_v13, %v2475_v36  ;;  %v830_v36 = vld [vmem:[%s3206_s10] sm:$0xff]  ;;  %v2289_v34 = vpack.c.bf16 %v833_v38, %v832_v40 }
 0x3bf   :  { %v2285_v42 = vpack.c.bf16 %v831_v37, %v830_v36 }
 0x3c1   :  { %2286 = vmatprep.subr.bf16.mxu0 %v2285_v42 }
 0x3c2   :  { %2288 = vmatpush3.bf16.msra.mxu0 %v2285_v42 }
 0x3c3   :  { %2290 = vmatprep.subr.bf16.mxu0 %v2289_v34 }
 0x3c6   :  { %2292 = vmatpush3.bf16.msra.mxu0 %v2289_v34 }
 0x3c7   :  { %2294 = vmatprep.subr.bf16.mxu0 %v2293_v47 }
 0x3ca   :  { %2296 = vmatpush3.bf16.msra.mxu0 %v2293_v47 }
 0x3cb   :  { %2298 = vmatprep.subr.bf16.mxu0 %v2297_v50 }
 0x3ce   :  { %2300 = vmatpush3.bf16.msra.mxu0 %v2297_v50 }
 0x3cf   :  { %2302 = vmatprep.subr.bf16.mxu0 %v2301_v53 }
 0x3d2   :  { %2304 = vmatpush3.bf16.msra.mxu0 %v2301_v53 }
 0x3d3   :  { %2306 = vmatprep.subr.bf16.mxu0 %v2305_v56 }
 0x3d6   :  { %2308 = vmatpush3.bf16.msra.mxu0 %v2305_v56 }
 0x3d7   :  { %2310 = vmatprep.subr.bf16.mxu0 %v2309_v59 }
 0x3da   :  { %2312 = vmatpush3.bf16.msra.mxu0 %v2309_v59 }
 0x3db   :  { %2314 = vmatprep.subr.bf16.mxu0 %v2313_v63 }
 0x3de   :  { %2316 = vmatpush3.bf16.msra.mxu0 %v2313_v63 }
 0x3ef   :  { %v514_v8 = vpop.permute.xlu0 %513 }
 0x3f0   :  { %v534_v19 = vsel %vm345_vm2, %v367_v16, %v514_v8 }
 0x3f3   :  { %v522_v10 = vpop.permute.xlu0 %521 }
 0x3f4   :  { %v512_v9 = vpop.permute.xlu1 %511  ;;  %v537_v22 = vsel %vm535_vm11, %v534_v19, %v522_v10 }
 0x3f5   :  { %v533_v17 = vsel %vm345_vm2, %v366_v15, %v512_v9 }
 0x3f8   :  { %v520_v14 = vpop.permute.xlu1 %519 }
 0x3f9   :  { %v530_v18 = vpop.permute.xlu0 %529  ;;  %v536_v20 = vsel %vm535_vm11, %v533_v17, %v520_v14 }
 0x3fa   :  { %v540_v24 = vsel %vm538_vm12, %v537_v22, %v530_v18 }
 0x3fc   :  { %v528_v21 = vpop.permute.xlu1 %527 }
 0x3fd   :  { %v539_v23 = vsel %vm538_vm12, %v536_v20, %v528_v21  ;;  %v759_v20 = vld [vmem:[%s3205_s9] sm:$0xf] }
 0x3fe   :  { %2092 = vmatprep.mubr.msk.f32.mxu1 %vm561_vm13, %v539_v23 }
 0x3ff   :  { %2093 = vmatmul.mubr.msk.f32.vlgmr.msra.gmra.mrb[2].mxu1 %vm561_vm13, %v540_v24 }
 0x400   :  { %2277 = vmatpush3.bf16.msra.mxu1 %v2274_v31  ;;  %v1903_v31 = vld [vmem:[%s3207_s11 + $0x28] sm:$0xff] }
 0x401   :  { %2279 = vmatprep.subr.bf16.mxu1 %v2278_v35 }
 0x404   :  { %2281 = vmatpush3.bf16.msra.mxu1 %v2278_v35 }
 0x405   :  { %2282 = vmatprep.subr.bf16.mxu1 %v2582_v27 }
 0x4d2   :  { %v2094_v0 = vpop.f32.mrb[2].mxu1 }
 0x4d3   :  { %v644_v2 = vmul.f32 0.25, %v2094_v0  ;;  %v634_v4 = vpop.f32.mrb[3].mxu1 }
 0x4d4   :  { %v643_v6 = vmul.f32 0.25, %v634_v4  ;;  %v938_v4 = vld [vmem:[%s3207_s11 + $0x8] sm:$0xff] }
 0x4d5   :  { %v653_v7 = vadd.f32 %v1895_v1, %v644_v2 }
 0x4d6   :  { %v652_v8 = vadd.f32 %v1895_v1, %v643_v6 }
 0x4d7   :  { %v662_v9 = vmul.f32 %v1896_v5, %v653_v7  ;;  %v1905_v7 = vld [vmem:[%s3207_s11 + $0x38] sm:$0xff] }
 0x4d8   :  { %v661_v10 = vmul.f32 %v1896_v5, %v652_v8 }
 0x4d9   :  { %v671_v11 = vadd.f32 %v1897_v3, %v662_v9 }
 0x4da   :  { %v670_v13 = vadd.f32 %v1897_v3, %v661_v10 }
 0x4db   :  { %v673_v15 = vmax.f32 %v671_v11, 0.0 }
 0x4dc   :  { %v672_v14 = vmax.f32 %v670_v13, 0.0 }
 0x4de   :  { %2103 = vmatprep.mubr.msk.f32.mxu1 %vm535_vm11, %v672_v14 }
 0x4df   :  { %2104 = vmatmul.mubr.msk.f32.vlgmr.msra.gmra.mrb[4].mxu1 %vm535_vm11, %v673_v15 }
 0x4e0   :  { %2110 = vmatprep.mubr.msk.f32.mxu1 %vm2583_vm1, %v2584_v28 }
 0x5b2   :  { %v2105_v16 = vpop.f32.mrb[4].mxu1 }
 0x5b3   :  { %v750_v17 = vpop.f32.mrb[5].mxu1 }
 0x5b4   :  { %2145 = vmatprep.mubr.f32.mxu0 %v750_v17  ;;  %v2283_v18 = vpack.c.bf16 %v2105_v16, %v750_v17  ;;  %v2959_v19 = vpack.i.bf16 %v2105_v16, %v750_v17  ;;  %v937_v17 = vld [vmem:[%s3207_s11] sm:$0xff] }
 0x5b5   :  { %2146 = vmatmul.mubr.f32.vlgmr.msra.gmra.mrb[4].mxu0 %v2105_v16 }
 0x5b6   :  { %2284 = vmatpush3.bf16.xpose.msra.mxu1 %v2283_v18 }
 0x5b7   :  { %2318 = vmatprep.subr.bf16.mxu1 %v2283_v18 }
 0x5bd   :  { %2111 = vmatmul.mubr.f32.vlgmr.msra.gmra.mrb[6].mxu1 %v759_v20 }
 0x5be   :  { %2320 = vmatpush3.bf16.msra.mxu1 %v2283_v18 }
 0x688   :  { %v2147_v21 = vpop.f32.mrb[4].mxu0 }
 0x689   :  { %1021 = vperm.xlu1 %2416, %v2147_v21   ;;  %974 = vperm.xlu0 %2415, %v2147_v21   ;;  %v912_v22 = vpop.f32.mrb[5].mxu0 }
 0x68d   :  { %2417 = vset.pattern.permute.xlu1 %v2586_v30  ;;  %2419 = vset.pattern.permute.xlu0 %v2587_v39 }
 0x68e   :  { %1064 = vperm.xlu0 %2419, %v912_v22   ;;  %970 = vperm.xlu1 %2417, %v912_v22  }
 0x690   :  { %v826_v23 = vpop.f32.mrb[6].mxu1 }
 0x691   :  { %v2112_v24 = vpop.f32.mrb[7].mxu1  ;;  %v1027_v25 = vrot.slane %v826_v23, %v2789_v44  ;;  %v980_v26 = vrot.slane %v826_v23, %v2791_v45  ;;  %v1074_v38 = vrot.slane %v826_v23, %v2809_v60  ;;  %v934_v57 = vrot.slane %v826_v23, %v2820_v12 }
 0x692   :  { %2421 = vset.pattern.permute.xlu0 %v2588_v41  ;;  %2418 = vset.pattern.permute.xlu1 %v2585_v29 }
 0x693   :  { %928 = vperm.xlu0 %2421, %v2147_v21   ;;  %1017 = vperm.xlu1 %2418, %v912_v22  }
 0x697   :  { %2420 = vset.pattern.permute.xlu1 %v2587_v39  ;;  %2438 = vset.pattern.permute.xlu0 %v2586_v30 }
 0x698   :  { %1068 = vperm.xlu1 %2420, %v2147_v21  }
 0x69c   :  { %2422 = vset.pattern.permute.xlu1 %v2588_v41 }
 0x69d   :  { %923 = vperm.xlu1 %2422, %v912_v22  }
 0x6a1   :  { %2439 = vset.pattern.permute.xlu1 %v2585_v29 }
 0x708   :  { %v1022_v32 = vpop.permute.xlu1 %1021  ;;  %v975_v35 = vpop.permute.xlu0 %974 }
 0x709   :  { %v1029_v36 = vadd.f32 %v1027_v25, %v1022_v32  ;;  %v982_v37 = vadd.f32 %v980_v26, %v975_v35 }
 0x70b   :  { %v1034_v40 = vadd.f32 %v1903_v31, %v1029_v36  ;;  %v987_v42 = vadd.f32 %v1901_v33, %v982_v37 }
 0x70d   :  { %v1065_v34 = vpop.permute.xlu0 %1064  ;;  %v971_v46 = vpop.permute.xlu1 %970  ;;  %vm989_vm14 = vcmp.ge.f32.partialorder %v987_v42, 0.0  ;;  %v991_v47 = vmul.f32 0.2, %v987_v42  ;;  %v1038_v48 = vmul.f32 0.2, %v1034_v40  ;;  %vm1036_vm15 = vcmp.ge.f32.partialorder %v1034_v40, 0.0 }
 0x70e   :  { %v981_v49 = vadd.f32 %v980_v26, %v971_v46  ;;  %v1075_v50 = vadd.f32 %v1074_v38, %v1065_v34 }
 0x70f   :  { %v993_v51 = vsel %vm989_vm14, %v987_v42, %v991_v47  ;;  %v1040_v55 = vsel %vm1036_vm15, %v1034_v40, %v1038_v48 }
 0x710   :  { %v986_v53 = vadd.f32 %v1900_v43, %v981_v49  ;;  %v997_v54 = vsel %vm345_vm2, %v993_v51, -inf  ;;  %v1080_v62 = vadd.f32 %v1904_v52, %v1075_v50  ;;  %v1044_v1 = vsel %vm345_vm2, %v1040_v55, -inf }
 0x711   :  { %998 = vmax.xlane.f32.xlu0 %v997_v54 }
 0x712   :  { %v929_v56 = vpop.permute.xlu0 %928  ;;  %v1018_v59 = vpop.permute.xlu1 %1017  ;;  %vm988_vm0 = vcmp.ge.f32.partialorder %v986_v53, 0.0  ;;  %v990_v61 = vmul.f32 0.2, %v986_v53  ;;  %v1084_v9 = vmul.f32 0.2, %v1080_v62  ;;  %vm1082_vm4 = vcmp.ge.f32.partialorder %v1080_v62, 0.0 }
 0x713   :  { %v1028_v63 = vadd.f32 %v1027_v25, %v1018_v59  ;;  %v936_v0 = vadd.f32 %v934_v57, %v929_v56 }
 0x714   :  { %v992_v2 = vsel %vm988_vm0, %v986_v53, %v990_v61  ;;  %v1086_v16 = vsel %vm1082_vm4, %v1080_v62, %v1084_v9 }
 0x715   :  { %v1033_v5 = vadd.f32 %v1902_v58, %v1028_v63  ;;  %1045 = vmax.xlane.f32.xlu0 %v1044_v1  ;;  %v994_v6 = vsel %vm345_vm2, %v992_v2, -inf  ;;  %v940_v10 = vadd.f32 %v938_v4, %v936_v0  ;;  %v1088_v23 = vsel %vm345_vm2, %v1086_v16, -inf }
 0x716   :  { %995 = vmax.xlane.f32.xlu1 %v994_v6 }
 0x717   :  { %v1069_v3 = vpop.permute.xlu1 %1068  ;;  %vm1035_vm3 = vcmp.ge.f32.partialorder %v1033_v5, 0.0  ;;  %v1037_v8 = vmul.f32 0.2, %v1033_v5  ;;  %v944_v21 = vmul.f32 0.2, %v940_v10  ;;  %vm942_vm6 = vcmp.ge.f32.partialorder %v940_v10, 0.0 }
 0x718   :  { %v1076_v11 = vadd.f32 %v1074_v38, %v1069_v3 }
 0x719   :  { %v1039_v13 = vsel %vm1035_vm3, %v1033_v5, %v1037_v8  ;;  %v3006_v31 = vsel %vm942_vm6, %v940_v10, %v944_v21 }
 0x71a   :  { %v1081_v14 = vadd.f32 %v1905_v7, %v1076_v11  ;;  %v1041_v15 = vsel %vm345_vm2, %v1039_v13, -inf  ;;  %v950_v33 = vsel %vm345_vm2, %v3006_v31, -inf }
 0x71b   :  { %1042 = vmax.xlane.f32.xlu1 %v1041_v15 }
 0x71c   :  { %v924_v18 = vpop.permute.xlu1 %923  ;;  %vm1083_vm5 = vcmp.ge.f32.partialorder %v1081_v14, 0.0  ;;  %v1085_v20 = vmul.f32 0.2, %v1081_v14 }
 0x71d   :  { %v935_v22 = vadd.f32 %v934_v57, %v924_v18 }
 0x71e   :  { %v1087_v24 = vsel %vm1083_vm5, %v1081_v14, %v1085_v20 }
 0x71f   :  { %v939_v25 = vadd.f32 %v937_v17, %v935_v22  ;;  %1089 = vmax.xlane.f32.xlu1 %v1088_v23  ;;  %v1091_v26 = vsel %vm345_vm2, %v1087_v24, -inf }
 0x720   :  { %1092 = vmax.xlane.f32.xlu0 %v1091_v26 }
 0x721   :  { %vm941_vm7 = vcmp.ge.f32.partialorder %v939_v25, 0.0  ;;  %v943_v32 = vmul.f32 0.2, %v939_v25 }
 0x723   :  { %v945_v35 = vsel %vm941_vm7, %v939_v25, %v943_v32 }
 0x724   :  { %951 = vmax.xlane.f32.xlu0 %v950_v33  ;;  %v947_v36 = vsel %vm345_vm2, %v945_v35, -inf }
 0x725   :  { %948 = vmax.xlane.f32.xlu1 %v947_v36 }
 0x736   :  { %2424 = vrot.lane.b32.xlu1 %v2959_v19, %s2589_s2 }
 0x79e   :  { %v999_v37 = vpop.xlane.xlu0 %998 }
 0x79f   :  { %v1001_v40 = vsub.f32 %v993_v51, %v999_v37 }
 0x7a1   :  { %v1004_v42 = vmul.f32 1.442695, %v1001_v40 }
 0x7a2   :  { %v1046_v38 = vpop.xlane.xlu0 %1045 }
 0x7a3   :  { %2494 = vpow2.f32 %v1004_v42  ;;  %v1048_v34 = vsub.f32 %v1040_v55, %v1046_v38  ;;  %v996_v43 = vpop.xlane.xlu1 %995 }
 0x7a4   :  { %v1000_v46 = vsub.f32 %v992_v2, %v996_v43 }
 0x7a5   :  { %v1051_v47 = vmul.f32 1.442695, %v1048_v34 }
 0x7a6   :  { %v1002_v48 = vmul.f32 1.442695, %v1000_v46 }
 0x7a7   :  { %2496 = vpow2.f32 %v1051_v47 }
 0x7a8   :  { %2498 = vpow2.f32 %v1002_v48  ;;  %v1043_v49 = vpop.xlane.xlu1 %1042 }
 0x7a9   :  { %v1047_v50 = vsub.f32 %v1039_v13, %v1043_v49 }
 0x7ab   :  { %v1049_v52 = vmul.f32 1.442695, %v1047_v50 }
 0x7ac   :  { %v1090_v53 = vpop.xlane.xlu1 %1089 }
 0x7ad   :  { %v2495_v54 = vpop.eup %2494  ;;  %2500 = vpow2.f32 %v1049_v52  ;;  %v1094_v56 = vsub.f32 %v1086_v16, %v1090_v53  ;;  %v1093_v57 = vpop.xlane.xlu0 %1092 }
 0x7ae   :  { %v1095_v58 = vsub.f32 %v1087_v24, %v1093_v57  ;;  %v1009_v51 = vsel %vm345_vm2, %v2495_v54, 0.0 }
 0x7af   :  { %v1096_v59 = vmul.f32 1.442695, %v1094_v56  ;;  %1010 = vadd.xlane.f32.xlu0 %v1009_v51 }
 0x7b0   :  { %v1098_v55 = vmul.f32 1.442695, %v1095_v58 }
 0x7b1   :  { %v2497_v61 = vpop.eup %2496  ;;  %2502 = vpow2.f32 %v1096_v59  ;;  %v952_v13 = vpop.xlane.xlu0 %951 }
 0x7b2   :  { %v2499_v62 = vpop.eup %2498  ;;  %2504 = vpow2.f32 %v1098_v55  ;;  %v949_v63 = vpop.xlane.xlu1 %948  ;;  %v1056_v0 = vsel %vm345_vm2, %v2497_v61, 0.0  ;;  %v954_v15 = vsub.f32 %v3006_v31, %v952_v13  ;;  %v1273_v13 = vld [vmem:[%s3211_s15 + $0x8] sm:$0xff] }
 0x7b3   :  { %1057 = vadd.xlane.f32.xlu0 %v1056_v0  ;;  %v1006_v1 = vsel %vm345_vm2, %v2499_v62, 0.0  ;;  %v953_v14 = vsub.f32 %v945_v35, %v949_v63 }
 0x7b4   :  { %1007 = vadd.xlane.f32.xlu1 %v1006_v1  ;;  %v957_v17 = vmul.f32 1.442695, %v954_v15  ;;  %v1274_v15 = vld [vmem:[%s3211_s15 + $0x10] sm:$0xff] }
 0x7b5   :  { %v955_v16 = vmul.f32 1.442695, %v953_v14 }
 0x7b6   :  { %v2425_v2 = vpop.permute.xlu1 %2424 }
 0x7b7   :  { %v2501_v4 = vpop.eup %2500  ;;  %v2427_v5 = vunpack.i.h.bf16 %v2425_v2  ;;  %v2426_v6 = vunpack.i.l.bf16 %v2425_v2  ;;  %2506 = vpow2.f32 %v955_v16  ;;  %v1275_v16 = vld [vmem:[%s3211_s15 + $0x18] sm:$0xff] }
 0x7b8   :  { %v1053_v7 = vsel %vm345_vm2, %v2501_v4, 0.0  ;;  %2508 = vpow2.f32 %v957_v17  ;;  %v2337_v17 = vpack.c.bf16 %v1275_v16, %v1274_v15  ;;  %v1920_v16 = vld [vmem:[%s3214_s18 + $0x20] sm:$0xff] }
 0x7b9   :  { %v2321_v3 = vpack.c.bf16 %v2427_v5, %v2426_v6  ;;  %1054 = vadd.xlane.f32.xlu1 %v1053_v7 }
 0x7bb   :  { %v2503_v8 = vpop.eup %2502  ;;  %2322 = vmatprep.subr.bf16.mxu1 %v2321_v3 }
 0x7bc   :  { %v2505_v9 = vpop.eup %2504  ;;  %2324 = vmatpush3.bf16.msra.mxu1 %v2321_v3  ;;  %v1100_v10 = vsel %vm345_vm2, %v2503_v8, 0.0 }
 0x7bd   :  { %1101 = vadd.xlane.f32.xlu1 %v1100_v10  ;;  %v1103_v11 = vsel %vm345_vm2, %v2505_v9, 0.0 }
 0x7be   :  { %1104 = vadd.xlane.f32.xlu0 %v1103_v11  ;;  %v1272_v11 = vld [vmem:[%s3211_s15] sm:$0xff] }
 0x7bf   :  { %v2333_v14 = vpack.c.bf16 %v1273_v13, %v1272_v11 }
 0x7c1   :  { %v2507_v18 = vpop.eup %2506 }
 0x7c2   :  { %v2509_v20 = vpop.eup %2508  ;;  %v959_v21 = vsel %vm345_vm2, %v2507_v18, 0.0 }
 0x7c3   :  { %v962_v22 = vsel %vm345_vm2, %v2509_v20, 0.0 }
 0x7ce   :  { %2434 = vrot.lane.b32.xlu1 %v2959_v19, %s2590_s27 }
 0x7d4   :  { %2429 = vrot.lane.b32.xlu0 %v2959_v19, %s2591_s3 }
 0x7f2   :  { %960 = vadd.xlane.f32.xlu1 %v959_v21  ;;  %v1439_v21 = vld [vmem:[%s3213_s17 + $0x10] sm:$0xff] }
 0x7f3   :  { %963 = vadd.xlane.f32.xlu0 %v962_v22 }
 0x83c   :  { %v1011_v23 = vpop.xlane.xlu0 %1010 }
 0x83d   :  { %2510 = vrcp.f32 %v1011_v23  ;;  %v1440_v23 = vld [vmem:[%s3213_s17 + $0x18] sm:$0xff] }
 0x840   :  { %v1058_v24 = vpop.xlane.xlu0 %1057 }
 0x841   :  { %2512 = vrcp.f32 %v1058_v24  ;;  %v1008_v19 = vpop.xlane.xlu1 %1007  ;;  %v2349_v24 = vpack.c.bf16 %v1440_v23, %v1439_v21 }
 0x842   :  { %2514 = vrcp.f32 %v1008_v19  ;;  %v1442_v19 = vld [vmem:[%s3213_s17 + $0x28] sm:$0xff] }
 0x846   :  { %v1055_v25 = vpop.xlane.xlu1 %1054 }
 0x847   :  { %v2511_v26 = vpop.eup %2510  ;;  %2516 = vrcp.f32 %v1055_v25 }
 0x848   :  { %v1015_v31 = vmul.f32 %v2511_v26, %v2495_v54  ;;  %v1443_v26 = vld [vmem:[%s3213_s17 + $0x30] sm:$0xff] }
 0x84a   :  { %1114 = vrot.lane.b32.xlu0 %v1015_v31, %s2592_s16  ;;  %v1102_v32 = vpop.xlane.xlu1 %1101  ;;  %v1444_v31 = vld [vmem:[%s3213_s17 + $0x38] sm:$0xff] }
 0x84b   :  { %v2513_v33 = vpop.eup %2512  ;;  %2518 = vrcp.f32 %v1102_v32  ;;  %v1105_v35 = vpop.xlane.xlu0 %1104  ;;  %v2357_v32 = vpack.c.bf16 %v1444_v31, %v1443_v26 }
 0x84c   :  { %v2515_v36 = vpop.eup %2514  ;;  %2520 = vrcp.f32 %v1105_v35  ;;  %v1062_v37 = vmul.f32 %v2513_v33, %v2497_v61  ;;  %v1908_v35 = vld [vmem:[%s3208_s12] ss:$0 sm:$0xff]  ;;  %s2596_s12 = smov [#allocation2]  }
 0x84d   :  { %v1014_v40 = vmul.f32 %v2515_v36, %v2499_v62 }
 0x84e   :  { %1122 = vrot.lane.b32.xlu0 %v1062_v37, %s2590_s27  ;;  %v2435_v42 = vpop.permute.xlu1 %2434 }
 0x84f   :  { %v2430_v38 = vpop.permute.xlu0 %2429  ;;  %1112 = vrot.lane.b32.xlu1 %v1014_v40, %s2592_s16  ;;  %v2437_v34 = vunpack.i.h.bf16 %v2435_v42  ;;  %v2436_v43 = vunpack.i.l.bf16 %v2435_v42  ;;  %v1909_v40 = vld [vmem:[%s3209_s13] ss:$0 sm:$0xff]  ;;  %s1874_s13 = sshll.u32 %s2596_s12, 4  ;;  %s1875_s13 = int_to_ptr.vmem [resolvable:$true] %s1874_s13 }
 0x850   :  { %v2432_v46 = vunpack.i.h.bf16 %v2430_v38  ;;  %v2431_v47 = vunpack.i.l.bf16 %v2430_v38  ;;  %p2563_p1 = scmp.lt.s32.totalorder %s1875_s13, %s1875_s13 }
 0x851   :  { %v2517_v48 = vpop.eup %2516  ;;  %v2329_v52 = vpack.c.bf16 %v2437_v34, %v2436_v43  ;;  %v1910_v34 = vld [vmem:[%s3210_s14] ss:$0 sm:$0xff]  ;;  %s3237_s14 = sld [smem:[#allocation12_spill]] }
 0x852   :  { %v2325_v49 = vpack.c.bf16 %v2432_v46, %v2431_v47  ;;  %v1061_v50 = vmul.f32 %v2517_v48, %v2501_v4 }
 0x854   :  { %1120 = vrot.lane.b32.xlu1 %v1061_v50, %s2590_s27  ;;  %2326 = vmatprep.subr.bf16.mxu1 %v2325_v49 }
 0x855   :  { %v2519_v53 = vpop.eup %2518  ;;  %2328 = vmatpush3.bf16.msra.mxu1 %v2325_v49 }
 0x856   :  { %v2521_v54 = vpop.eup %2520  ;;  %2330 = vmatprep.subr.bf16.mxu1 %v2329_v52  ;;  %v1108_v56 = vmul.f32 %v2519_v53, %v2503_v8 }
 0x857   :  { %v1109_v57 = vmul.f32 %v2521_v54, %v2505_v9 }
 0x858   :  { %1128 = vrot.lane.b32.xlu1 %v1108_v56, %s2593_s28 }
 0x859   :  { %1130 = vrot.lane.b32.xlu0 %v1109_v57, %s2593_s28  ;;  %2332 = vmatpush3.bf16.msra.mxu1 %v2329_v52 }
 0x85a   :  { %2334 = vmatprep.subr.bf16.mxu1 %v2333_v14 }
 0x87f   :  { %v961_v58 = vpop.xlane.xlu1 %960 }
 0x880   :  { %v964_v51 = vpop.xlane.xlu0 %963  ;;  %2522 = vrcp.f32 %v961_v58  ;;  %v1357_v58 = vld [vmem:[%s3237_s14] sm:$0xf] }
 0x881   :  { %2524 = vrcp.f32 %v964_v51 }
 0x88a   :  { %v2523_v61 = vpop.eup %2522 }
 0x88b   :  { %v2525_v62 = vpop.eup %2524  ;;  %v967_v1 = vmul.f32 %v2523_v61, %v2507_v18  ;;  %v1437_v18 = vld [vmem:[%s3213_s17] sm:$0xff] }
 0x88c   :  { %v968_v2 = vmul.f32 %v2525_v62, %v2509_v20  ;;  %v1438_v20 = vld [vmem:[%s3213_s17 + $0x8] sm:$0xff] }
 0x88d   :  { %v2345_v22 = vpack.c.bf16 %v1438_v20, %v1437_v18  ;;  %v1921_v62 = vld [vmem:[%s3214_s18 + $0x28] sm:$0xff] }
 0x88f   :  { %2346 = vmatprep.subr.bf16.mxu0 %v2345_v22 }
 0x890   :  { %2348 = vmatpush3.bf16.msra.mxu0 %v2345_v22 }
 0x891   :  { %2350 = vmatprep.subr.bf16.mxu0 %v2349_v24 }
 0x894   :  { %2352 = vmatpush3.bf16.msra.mxu0 %v2349_v24 }
 0x8bc   :  { %v1115_v59 = vpop.permute.xlu0 %1114 }
 0x8bd   :  { %v1135_v5 = vsel %vm345_vm2, %v968_v2, %v1115_v59 }
 0x8c0   :  { %v1123_v0 = vpop.permute.xlu0 %1122 }
 0x8c1   :  { %v1113_v55 = vpop.permute.xlu1 %1112  ;;  %v1137_v3 = vsel %vm535_vm11, %v1135_v5, %v1123_v0 }
 0x8c2   :  { %v1134_v4 = vsel %vm345_vm2, %v967_v1, %v1113_v55 }
 0x8c6   :  { %v1121_v63 = vpop.permute.xlu1 %1120 }
 0x8c7   :  { %v1136_v6 = vsel %vm535_vm11, %v1134_v4, %v1121_v63 }
 0x8ca   :  { %v1129_v7 = vpop.permute.xlu1 %1128 }
 0x8cb   :  { %v1138_v8 = vsel %vm538_vm12, %v1136_v6, %v1129_v7  ;;  %v1131_v9 = vpop.permute.xlu0 %1130 }
 0x8cc   :  { %v1139_v10 = vsel %vm538_vm12, %v1137_v3, %v1131_v9  ;;  %2164 = vmatprep.mubr.msk.f32.mxu1 %vm561_vm13, %v1138_v8 }
 0x8cd   :  { %2165 = vmatmul.mubr.msk.f32.vlgmr.msra.gmra.mrb[8].mxu1 %vm561_vm13, %v1139_v10  ;;  %v1922_v10 = vld [vmem:[%s3214_s18 + $0x30] sm:$0xff] }
 0x8ce   :  { %2336 = vmatpush3.bf16.msra.mxu1 %v2333_v14 }
 0x8cf   :  { %2338 = vmatprep.subr.bf16.mxu1 %v2337_v17 }
 0x8d2   :  { %2340 = vmatpush3.bf16.msra.mxu1 %v2337_v17 }
 0x8d3   :  { %2341 = vmatprep.subr.bf16.mxu1 %v2582_v27  ;;  %v1441_v27 = vld [vmem:[%s3213_s17 + $0x20] sm:$0xff] }
 0x8d4   :  { %v2353_v25 = vpack.c.bf16 %v1442_v19, %v1441_v27  ;;  %v1537_v27 = vld [vmem:[%s3214_s18 + $0x8] sm:$0xff] }
 0x8d6   :  { %2354 = vmatprep.subr.bf16.mxu0 %v2353_v25 }
 0x8d7   :  { %2356 = vmatpush3.bf16.msra.mxu0 %v2353_v25  ;;  %v1923_v25 = vld [vmem:[%s3214_s18 + $0x38] sm:$0xff] }
 0x8d8   :  { %2358 = vmatprep.subr.bf16.mxu0 %v2357_v32 }
 0x8db   :  { %2360 = vmatpush3.bf16.msra.mxu0 %v2357_v32 }
 0x9a0   :  { %v2166_v33 = vpop.f32.mrb[8].mxu1 }
 0x9a1   :  { %v1242_v36 = vmul.f32 0.25, %v2166_v33  ;;  %v1232_v37 = vpop.f32.mrb[9].mxu1 }
 0x9a2   :  { %v1241_v42 = vmul.f32 0.25, %v1232_v37 }
 0x9a3   :  { %v1251_v38 = vadd.f32 %v1908_v35, %v1242_v36 }
 0x9a4   :  { %v1250_v43 = vadd.f32 %v1908_v35, %v1241_v42 }
 0x9a5   :  { %v1260_v46 = vmul.f32 %v1909_v40, %v1251_v38  ;;  %v1536_v38 = vld [vmem:[%s3214_s18] sm:$0xff] }
 0x9a6   :  { %v1259_v47 = vmul.f32 %v1909_v40, %v1250_v43 }
 0x9a7   :  { %v1269_v48 = vadd.f32 %v1910_v34, %v1260_v46 }
 0x9a8   :  { %v1268_v49 = vadd.f32 %v1910_v34, %v1259_v47 }
 0x9a9   :  { %v1271_v52 = vmax.f32 %v1269_v48, 0.0 }
 0x9aa   :  { %v1270_v50 = vmax.f32 %v1268_v49, 0.0 }
 0x9ac   :  { %2175 = vmatprep.mubr.msk.f32.mxu1 %vm535_vm11, %v1270_v50 }
 0x9ad   :  { %2176 = vmatmul.mubr.msk.f32.vlgmr.msra.gmra.mrb[10].mxu1 %vm535_vm11, %v1271_v52 }
 0x9ae   :  { %2182 = vmatprep.mubr.msk.f32.mxu1 %vm2583_vm1, %v2584_v28 }
 0xa80   :  { %v2177_v53 = vpop.f32.mrb[10].mxu1 }
 0xa81   :  { %v1348_v54 = vpop.f32.mrb[11].mxu1 }
 0xa82   :  { %v2342_v56 = vpack.c.bf16 %v2177_v53, %v1348_v54  ;;  %2201 = vmatprep.mubr.msk.f32.mxu0 %vm561_vm13, %v1348_v54  ;;  %v3093_v57 = vpack.i.bf16 %v2177_v53, %v1348_v54 }
 0xa83   :  { %2202 = vmatmul.mubr.msk.f32.vlgmr.msra.gmra.mrb[6].mxu0 %vm561_vm13, %v2177_v53 }
 0xa84   :  { %2344 = vmatpush3.bf16.xpose.msk.msra.mxu1 %vm2343_vm8, %v2342_v56 }
 0xa85   :  { %2362 = vmatprep.subr.bf16.mxu1 %v2342_v56 }
 0xa8b   :  { %2183 = vmatmul.mubr.msk.f32.vlgmr.msra.gmra.mrb[12].mxu1 %vm561_vm13, %v1357_v58 }
 0xa8c   :  { %2364 = vmatpush3.bf16.msra.mxu1 %v2342_v56 }
 0xb56   :  { %v2203_v28 = vpop.f32.mrb[6].mxu0 }
 0xb57   :  { %1620 = vperm.xlu1 %2439, %v2203_v28   ;;  %1573 = vperm.xlu0 %2438, %v2203_v28   ;;  %v1511_v51 = vpop.f32.mrb[7].mxu0 }
 0xb5b   :  { %2440 = vset.pattern.permute.xlu1 %v2586_v30  ;;  %2442 = vset.pattern.permute.xlu0 %v2587_v39 }
 0xb5c   :  { %1663 = vperm.xlu0 %2442, %v1511_v51   ;;  %1569 = vperm.xlu1 %2440, %v1511_v51  }
 0xb5e   :  { %v1433_v59 = vpop.f32.mrb[12].mxu1 }
 0xb5f   :  { %v2184_v55 = vpop.f32.mrb[13].mxu1  ;;  %v1626_v30 = vrot.slane %v1433_v59, %v2789_v44  ;;  %v1579_v61 = vrot.slane %v1433_v59, %v2791_v45  ;;  %v1918_v44 = vld [vmem:[%s3214_s18 + $0x10] sm:$0xff]  ;;  %v1533_v15 = vrot.slane %v1433_v59, %v2820_v12 }
 0xb60   :  { %2444 = vset.pattern.permute.xlu0 %v2588_v41  ;;  %2441 = vset.pattern.permute.xlu1 %v2585_v29  ;;  %v1919_v29 = vld [vmem:[%s3214_s18 + $0x18] sm:$0xff]  ;;  %s2594_s18 = smov 112  }
 0xb61   :  { %1527 = vperm.xlu0 %2444, %v2203_v28   ;;  %1616 = vperm.xlu1 %2441, %v1511_v51  }
 0xb65   :  { %2443 = vset.pattern.permute.xlu1 %v2587_v39  ;;  %2461 = vset.pattern.permute.xlu0 %v2587_v39 }
 0xb66   :  { %1667 = vperm.xlu1 %2443, %v2203_v28  }
 0xb6a   :  { %2445 = vset.pattern.permute.xlu1 %v2588_v41  ;;  %v1673_v41 = vrot.slane %v1433_v59, %v2809_v60 }
 0xb6b   :  { %1522 = vperm.xlu1 %2445, %v1511_v51  }
 0xbd6   :  { %v1621_v63 = vpop.permute.xlu1 %1620  ;;  %v1574_v0 = vpop.permute.xlu0 %1573 }
 0xbd7   :  { %v1628_v1 = vadd.f32 %v1626_v30, %v1621_v63  ;;  %v1581_v39 = vadd.f32 %v1579_v61, %v1574_v0 }
 0xbd9   :  { %v1633_v2 = vadd.f32 %v1921_v62, %v1628_v1  ;;  %v1586_v4 = vadd.f32 %v1919_v29, %v1581_v39 }
 0xbdb   :  { %v1664_v5 = vpop.permute.xlu0 %1663  ;;  %v1570_v45 = vpop.permute.xlu1 %1569  ;;  %vm1588_vm1 = vcmp.ge.f32.partialorder %v1586_v4, 0.0  ;;  %v1590_v6 = vmul.f32 0.2, %v1586_v4  ;;  %v1637_v7 = vmul.f32 0.2, %v1633_v2  ;;  %vm1635_vm9 = vcmp.ge.f32.partialorder %v1633_v2, 0.0 }
 0xbdc   :  { %v1580_v3 = vadd.f32 %v1579_v61, %v1570_v45  ;;  %v1674_v8 = vadd.f32 %v1673_v41, %v1664_v5 }
 0xbdd   :  { %v1592_v9 = vsel %vm1588_vm1, %v1586_v4, %v1590_v6  ;;  %v1639_v13 = vsel %vm1635_vm9, %v1633_v2, %v1637_v7 }
 0xbde   :  { %v1585_v11 = vadd.f32 %v1918_v44, %v1580_v3  ;;  %v1596_v60 = vsel %vm345_vm2, %v1592_v9, -inf  ;;  %v1679_v20 = vadd.f32 %v1922_v10, %v1674_v8  ;;  %v1643_v23 = vsel %vm345_vm2, %v1639_v13, -inf }
 0xbdf   :  { %1597 = vmax.xlane.f32.xlu0 %v1596_v60 }
 0xbe0   :  { %v1528_v14 = vpop.permute.xlu0 %1527  ;;  %v1617_v17 = vpop.permute.xlu1 %1616  ;;  %vm1587_vm10 = vcmp.ge.f32.partialorder %v1585_v11, 0.0  ;;  %v1589_v18 = vmul.f32 0.2, %v1585_v11  ;;  %v1683_v32 = vmul.f32 0.2, %v1679_v20  ;;  %vm1681_vm15 = vcmp.ge.f32.partialorder %v1679_v20, 0.0 }
 0xbe1   :  { %v1627_v21 = vadd.f32 %v1626_v30, %v1617_v17  ;;  %v1535_v22 = vadd.f32 %v1533_v15, %v1528_v14 }
 0xbe2   :  { %v1591_v24 = vsel %vm1587_vm10, %v1585_v11, %v1589_v18  ;;  %v1685_v42 = vsel %vm1681_vm15, %v1679_v20, %v1683_v32 }
 0xbe3   :  { %v1632_v19 = vadd.f32 %v1920_v16, %v1627_v21  ;;  %1644 = vmax.xlane.f32.xlu0 %v1643_v23  ;;  %v1593_v12 = vsel %vm345_vm2, %v1591_v24, -inf  ;;  %v1539_v33 = vadd.f32 %v1537_v27, %v1535_v22  ;;  %v1687_v48 = vsel %vm345_vm2, %v1685_v42, -inf }
 0xbe4   :  { %1594 = vmax.xlane.f32.xlu1 %v1593_v12 }
 0xbe5   :  { %v1668_v26 = vpop.permute.xlu1 %1667  ;;  %vm1634_vm14 = vcmp.ge.f32.partialorder %v1632_v19, 0.0  ;;  %v1636_v31 = vmul.f32 0.2, %v1632_v19  ;;  %v1543_v46 = vmul.f32 0.2, %v1539_v33  ;;  %vm1541_vm3 = vcmp.ge.f32.partialorder %v1539_v33, 0.0 }
 0xbe6   :  { %v1675_v35 = vadd.f32 %v1673_v41, %v1668_v26 }
 0xbe7   :  { %v1638_v36 = vsel %vm1634_vm14, %v1632_v19, %v1636_v31  ;;  %v1545_v53 = vsel %vm1541_vm3, %v1539_v33, %v1543_v46 }
 0xbe8   :  { %v1680_v37 = vadd.f32 %v1923_v25, %v1675_v35  ;;  %v1640_v40 = vsel %vm345_vm2, %v1638_v36, -inf  ;;  %v1549_v56 = vsel %vm345_vm2, %v1545_v53, -inf }
 0xbe9   :  { %1641 = vmax.xlane.f32.xlu1 %v1640_v40 }
 0xbea   :  { %v1523_v34 = vpop.permute.xlu1 %1522  ;;  %vm1682_vm0 = vcmp.ge.f32.partialorder %v1680_v37, 0.0  ;;  %v1684_v43 = vmul.f32 0.2, %v1680_v37 }
 0xbeb   :  { %v1534_v47 = vadd.f32 %v1533_v15, %v1523_v34 }
 0xbec   :  { %v1686_v49 = vsel %vm1682_vm0, %v1680_v37, %v1684_v43 }
 0xbed   :  { %v1538_v50 = vadd.f32 %v1536_v38, %v1534_v47  ;;  %1688 = vmax.xlane.f32.xlu1 %v1687_v48  ;;  %v1690_v52 = vsel %vm345_vm2, %v1686_v49, -inf }
 0xbee   :  { %1691 = vmax.xlane.f32.xlu0 %v1690_v52 }
 0xbef   :  { %vm1540_vm4 = vcmp.ge.f32.partialorder %v1538_v50, 0.0  ;;  %v1542_v54 = vmul.f32 0.2, %v1538_v50 }
 0xbf1   :  { %v1544_v58 = vsel %vm1540_vm4, %v1538_v50, %v1542_v54 }
 0xbf2   :  { %1550 = vmax.xlane.f32.xlu0 %v1549_v56  ;;  %v1546_v28 = vsel %vm345_vm2, %v1544_v58, -inf }
 0xbf3   :  { %1547 = vmax.xlane.f32.xlu1 %v1546_v28 }
 0xc6c   :  { %v1598_v51 = vpop.xlane.xlu0 %1597 }
 0xc6d   :  { %v1600_v59 = vsub.f32 %v1592_v9, %v1598_v51 }
 0xc6f   :  { %v1603_v55 = vmul.f32 1.442695, %v1600_v59 }
 0xc70   :  { %v1645_v30 = vpop.xlane.xlu0 %1644 }
 0xc71   :  { %2526 = vpow2.f32 %v1603_v55  ;;  %v1647_v61 = vsub.f32 %v1639_v13, %v1645_v30  ;;  %v1595_v62 = vpop.xlane.xlu1 %1594 }
 0xc72   :  { %v1599_v63 = vsub.f32 %v1591_v24, %v1595_v62 }
 0xc73   :  { %v1650_v29 = vmul.f32 1.442695, %v1647_v61 }
 0xc74   :  { %v1601_v0 = vmul.f32 1.442695, %v1599_v63 }
 0xc75   :  { %2528 = vpow2.f32 %v1650_v29 }
 0xc76   :  { %2530 = vpow2.f32 %v1601_v0  ;;  %v1642_v1 = vpop.xlane.xlu1 %1641 }
 0xc77   :  { %v1646_v39 = vsub.f32 %v1638_v36, %v1642_v1 }
 0xc79   :  { %v1648_v2 = vmul.f32 1.442695, %v1646_v39 }
 0xc7a   :  { %v1689_v4 = vpop.xlane.xlu1 %1688 }
 0xc7b   :  { %v2527_v41 = vpop.eup %2526  ;;  %2532 = vpow2.f32 %v1648_v2  ;;  %v1693_v5 = vsub.f32 %v1685_v42, %v1689_v4  ;;  %v1692_v44 = vpop.xlane.xlu0 %1691 }
 0xc7c   :  { %v1694_v45 = vsub.f32 %v1686_v49, %v1692_v44  ;;  %v1608_v6 = vsel %vm345_vm2, %v2527_v41, 0.0 }
 0xc7d   :  { %v1695_v7 = vmul.f32 1.442695, %v1693_v5  ;;  %1609 = vadd.xlane.f32.xlu0 %v1608_v6 }
 0xc7e   :  { %v1697_v3 = vmul.f32 1.442695, %v1694_v45 }
 0xc7f   :  { %v2529_v8 = vpop.eup %2528  ;;  %2534 = vpow2.f32 %v1695_v7  ;;  %v1551_v9 = vpop.xlane.xlu0 %1550 }
 0xc80   :  { %v2531_v10 = vpop.eup %2530  ;;  %2536 = vpow2.f32 %v1697_v3  ;;  %v1553_v11 = vsub.f32 %v1545_v53, %v1551_v9  ;;  %v1548_v60 = vpop.xlane.xlu1 %1547  ;;  %v1655_v13 = vsel %vm345_vm2, %v2529_v8, 0.0 }
 0xc81   :  { %v1552_v14 = vsub.f32 %v1544_v58, %v1548_v60  ;;  %1656 = vadd.xlane.f32.xlu0 %v1655_v13  ;;  %v1605_v15 = vsel %vm345_vm2, %v2531_v10, 0.0  ;;  %v1926_v13 = vld [vmem:[%s3215_s19] ss:$0 sm:$0xff]  ;;  %s2558_s19 = scalar_lea.vmem %s1875_s13, 256 }
 0xc82   :  { %v1556_v16 = vmul.f32 1.442695, %v1553_v11  ;;  %1606 = vadd.xlane.f32.xlu1 %v1605_v15  ;;  %p2559_p0 = scmp.ne.s32.totalorder %s1875_s13, %s2558_s19  ;;  %p2564_p2 = scmp.lt.s32.totalorder %s2558_s19, %s2558_s19 }
 0xc83   :  { %v1554_v17 = vmul.f32 1.442695, %v1552_v14 }
 0xc84   :  { %2538 = vpow2.f32 %v1556_v16  ;;  %v1927_v16 = vld [vmem:[%s3216_s20] ss:$0 sm:$0xff]  ;;  %p2565_p3 = por %p2564_p2, %p2563_p1 }
 0xc85   :  { %v2533_v18 = vpop.eup %2532  ;;  %2540 = vpow2.f32 %v1554_v17 }
 0xc86   :  { %v1652_v20 = vsel %vm345_vm2, %v2533_v18, 0.0  ;;  %p2566_p4 = pnand %p2565_p3, %p2559_p0 }
 0xc87   :  { %1653 = vadd.xlane.f32.xlu1 %v1652_v20  ;;  %v1928_v20 = vld [vmem:[%s3217_s21] ss:$0 sm:$0xff] }
 0xc89   :  { %v2535_v21 = vpop.eup %2534 }
 0xc8a   :  { %v2537_v22 = vpop.eup %2536  ;;  %v1699_v23 = vsel %vm345_vm2, %v2535_v21, 0.0 }
 0xc8b   :  { %1700 = vadd.xlane.f32.xlu1 %v1699_v23  ;;  %v1702_v24 = vsel %vm345_vm2, %v2537_v22, 0.0 }
 0xc8c   :  { %1703 = vadd.xlane.f32.xlu0 %v1702_v24 }
 0xc8e   :  { %v3149_v27 = vpop.eup %2538 }
 0xc8f   :  { %v2541_v19 = vpop.eup %2540  ;;  %v1561_v12 = vsel %vm345_vm2, %v3149_v27, 0.0 }
 0xc90   :  { %1562 = vadd.xlane.f32.xlu0 %v1561_v12  ;;  %v1558_v25 = vsel %vm345_vm2, %v2541_v19, 0.0 }
 0xc91   :  { %1559 = vadd.xlane.f32.xlu1 %v1558_v25 }
 0xca6   :  { %2447 = vrot.lane.b32.xlu0 %v3093_v57, %s2594_s18 }
 0xd0a   :  { %v1610_v26 = vpop.xlane.xlu0 %1609 }
 0xd0b   :  { %2542 = vrcp.f32 %v1610_v26 }
 0xd0e   :  { %v1657_v31 = vpop.xlane.xlu0 %1656 }
 0xd0f   :  { %2544 = vrcp.f32 %v1657_v31  ;;  %v1607_v32 = vpop.xlane.xlu1 %1606 }
 0xd14   :  { %v1654_v33 = vpop.xlane.xlu1 %1653 }
 0xd15   :  { %v2543_v35 = vpop.eup %2542 }
 0xd16   :  { %v1614_v36 = vmul.f32 %v2543_v35, %v2527_v41 }
 0xd18   :  { %1713 = vrot.lane.b32.xlu0 %v1614_v36, %s2592_s16  ;;  %v1701_v37 = vpop.xlane.xlu1 %1700 }
 0xd19   :  { %v2545_v40 = vpop.eup %2544  ;;  %2546 = vrcp.f32 %v1701_v37  ;;  %v1704_v42 = vpop.xlane.xlu0 %1703 }
 0xd1a   :  { %2548 = vrcp.f32 %v1704_v42  ;;  %v1661_v38 = vmul.f32 %v2545_v40, %v2529_v8 }
 0xd1b   :  { %2550 = vrcp.f32 %v1607_v32 }
 0xd1c   :  { %1721 = vrot.lane.b32.xlu1 %v1661_v38, %s2590_s27  ;;  %2552 = vrcp.f32 %v1654_v33 }
 0xd1d   :  { %v1563_v34 = vpop.xlane.xlu0 %1562 }
 0xd1e   :  { %v1560_v51 = vpop.xlane.xlu1 %1559 }
 0xd1f   :  { %2554 = vrcp.f32 %v1560_v51 }
 0xd20   :  { %2556 = vrcp.f32 %v1563_v34 }
 0xd21   :  { %v2448_v43 = vpop.permute.xlu0 %2447 }
 0xd22   :  { %v2450_v46 = vunpack.i.h.bf16 %v2448_v43  ;;  %v2449_v47 = vunpack.i.l.bf16 %v2448_v43 }
 0xd23   :  { %v2547_v48 = vpop.eup %2546 }
 0xd24   :  { %v2549_v49 = vpop.eup %2548  ;;  %v2365_v50 = vpack.c.bf16 %v2450_v46, %v2449_v47  ;;  %v1707_v52 = vmul.f32 %v2547_v48, %v2535_v21 }
 0xd25   :  { %v1708_v53 = vmul.f32 %v2549_v49, %v2537_v22  ;;  %v2551_v54 = vpop.eup %2550 }
 0xd26   :  { %2366 = vmatprep.subr.bf16.mxu1 %v2365_v50  ;;  %1727 = vrot.lane.b32.xlu0 %v1707_v52, %s2593_s28  ;;  %v1613_v56 = vmul.f32 %v2551_v54, %v2531_v10  ;;  %v2553_v58 = vpop.eup %2552 }
 0xd27   :  { %2368 = vmatpush3.bf16.msra.mxu1 %v2365_v50  ;;  %1729 = vrot.lane.b32.xlu1 %v1708_v53, %s2593_s28  ;;  %v1660_v28 = vmul.f32 %v2553_v58, %v2533_v18 }
 0xd29   :  { %v2555_v61 = vpop.eup %2554 }
 0xd2a   :  { %2457 = vrot.lane.b32.xlu0 %v3093_v57, %s2595_s24  ;;  %v1566_v29 = vmul.f32 %v2555_v61, %v2541_v19  ;;  %v2557_v7 = vpop.eup %2556 }
 0xd2b   :  { %1711 = vrot.lane.b32.xlu1 %v1613_v56, %s2592_s16  ;;  %v1567_v8 = vmul.f32 %v2557_v7, %v3149_v27 }
 0xd2f   :  { %1719 = vrot.lane.b32.xlu1 %v1660_v28, %s2590_s27 }
 0xd33   :  { %2452 = vrot.lane.b32.xlu1 %v3093_v57, %s2589_s2 }
 0xd8a   :  { %v1714_v55 = vpop.permute.xlu0 %1713 }
 0xd8b   :  { %v1734_v9 = vsel %vm345_vm2, %v1567_v8, %v1714_v55 }
 0xd8e   :  { %v1722_v59 = vpop.permute.xlu1 %1721 }
 0xd8f   :  { %v1736_v10 = vsel %vm535_vm11, %v1734_v9, %v1722_v59 }
 0xd98   :  { %v1728_v62 = vpop.permute.xlu0 %1727 }
 0xd99   :  { %v1730_v30 = vpop.permute.xlu1 %1729 }
 0xd9a   :  { %v1738_v11 = vsel %vm538_vm12, %v1736_v10, %v1730_v30 }
 0xd9c   :  { %v2458_v2 = vpop.permute.xlu0 %2457 }
 0xd9d   :  { %v1712_v63 = vpop.permute.xlu1 %1711  ;;  %v2460_v41 = vunpack.i.h.bf16 %v2458_v2  ;;  %v2459_v5 = vunpack.i.l.bf16 %v2458_v2 }
 0xd9e   :  { %v1733_v0 = vsel %vm345_vm2, %v1566_v29, %v1712_v63 }
 0xd9f   :  { %v2373_v3 = vpack.c.bf16 %v2460_v41, %v2459_v5 }
 0xda1   :  { %v1720_v1 = vpop.permute.xlu1 %1719 }
 0xda2   :  { %v1735_v39 = vsel %vm535_vm11, %v1733_v0, %v1720_v1 }
 0xda3   :  { %v1737_v4 = vsel %vm538_vm12, %v1735_v39, %v1728_v62 }
 0xda4   :  { %2220 = vmatprep.mubr.msk.f32.mxu1 %vm561_vm13, %v1737_v4 }
 0xda5   :  { %v2453_v57 = vpop.permute.xlu1 %2452 }
 0xda6   :  { %v2455_v44 = vunpack.i.h.bf16 %v2453_v57  ;;  %v2454_v45 = vunpack.i.l.bf16 %v2453_v57 }
 0xda8   :  { %v2369_v6 = vpack.c.bf16 %v2455_v44, %v2454_v45 }
 0xdaa   :  { %2370 = vmatprep.subr.bf16.mxu1 %v2369_v6 }
 0xdab   :  { %2372 = vmatpush3.bf16.msra.mxu1 %v2369_v6 }
 0xdac   :  { %2374 = vmatprep.subr.bf16.mxu1 %v2373_v3 }
 0xdaf   :  { %2376 = vmatpush3.bf16.msra.mxu1 %v2373_v3 }
 0xdb2   :  { %2221 = vmatmul.mubr.msk.f32.vlgmr.msra.gmra.mrb[14].mxu1 %vm561_vm13, %v1738_v11 }
 0xe85   :  { %v2222_v60 = vpop.f32.mrb[14].mxu1 }
 0xe86   :  { %v1839_v14 = vmul.f32 0.25, %v2222_v60  ;;  %v1829_v15 = vpop.f32.mrb[15].mxu1 }
 0xe87   :  { %v1838_v17 = vmul.f32 0.25, %v1829_v15 }
 0xe88   :  { %v1848_v18 = vadd.f32 %v1926_v13, %v1839_v14 }
 0xe89   :  { %v1847_v21 = vadd.f32 %v1926_v13, %v1838_v17 }
 0xe8a   :  { %v1857_v22 = vmul.f32 %v1927_v16, %v1848_v18 }
 0xe8b   :  { %v1856_v23 = vmul.f32 %v1927_v16, %v1847_v21 }
 0xe8c   :  { %v1866_v24 = vadd.f32 %v1928_v20, %v1857_v22 }
 0xe8d   :  { %v1865_v27 = vadd.f32 %v1928_v20, %v1856_v23 }
 0xe8e   :  { %1868 = vst.msk [vmem:[#allocation2 + $0x8] sm:$0xff] %vm345_vm2, %v1866_v24 }
 0xe8f   :  { %1867 = vst.msk [vmem:[#allocation2] sm:$0xff] %vm345_vm2, %v1865_v27 }
 0xe90   :  { %2569 = shalt.err (!%p2566_p4)
}
 0xe91   :  { %s2570_s14 = scalar_lea.hbm %s3218_s22, 256 }
 0xe92   :  { %p2571_p5 = scmp.ne.s32.totalorder %s3218_s22, %s2570_s14  ;;  %p2574_p6 = scmp.lt.u32.totalorder %s2570_s14, %s3218_s22 }
 0xe94   :  { %p2576_p7 = pnand %p2574_p6, %p2571_p5 }
 0xe96   :  { %2579 = shalt.err (!%p2576_p7)
}
 0xe97   :  { %s2597_s15 = smov 128   ;;  %s2598_s29 = smov 8  }
 0xe98   :  { %1880 = dma.vmem_to_hbm [thread:$0]  %s1875_s13, 256, %s3218_s22, [#allocation3], %s2597_s15, %s2597_s15, %s2598_s29  }
 0xe99   :  { %2580 = dma.done.wait [#allocation3], 256  }
 0xe9a   :  { %2581 = vsyncadd [#allocation3], 4294967040 }
 0xe9b   :  { %1884 = vsyncpa [#allocation3], 1 }

</bundles_post_ra>
